<compile_context>
chip_gen: v6e
topology: v6e:2x2x1
jax: 0.10.0
libtpu: 0.0.40
codegen_flags: <defaults>
</compile_context>

<pallas_src>
import jax
import jax.numpy as jnp
from jax.experimental import pallas as pl
from jax.experimental.pallas import tpu as pltpu

EPS = 1e-5

_VMEM = pl.BlockSpec(memory_space=pltpu.MemorySpace.VMEM)


def _round_up(x, m):
    return ((x + m - 1) // m) * m


# ---------------------------------------------------------------- kernels ---
def _conv_bn_relu_kernel(p_ref, w_ref, g_ref, b_ref, o_ref):
    """(R,K)bf16 @ (K,C)bf16 -> f32, then train-mode BN over rows + ReLU.

    Conv bias is omitted on purpose (cancelled exactly by the BN mean
    subtraction). BN statistics are computed in one pass (sum / sum-of-squares)
    in f32, biased variance, eps = 1e-5 (PyTorch training mode).
    """
    y = jnp.dot(p_ref[...], w_ref[...], preferred_element_type=jnp.float32)
    inv_r = 1.0 / y.shape[0]
    mean = jnp.sum(y, axis=0, keepdims=True) * inv_r
    var = jnp.maximum(jnp.sum(y * y, axis=0, keepdims=True) * inv_r - mean * mean, 0.0)
    scale = jax.lax.rsqrt(var + EPS) * g_ref[...]
    o_ref[...] = jnp.maximum((y - mean) * scale + b_ref[...], 0.0)


def _conv_bn_relu_head_kernel(p_ref, w_ref, g_ref, b_ref, w3_ref, b3_ref, o_ref):
    """conv2 matmul + BN + ReLU, then conv3 (full-map dot) + sigmoid.

    conv3's 4x4 kernel covers the whole 4x4 conv2 output map, so per sample it
    is a dot over (positions x channels). w3_ref is pre-arranged to (R2, Cp),
    row-aligned with the conv2 output rows, so the head is a pure 2-D VPU
    multiply + reduce (keeps the MXU free, avoids a 1-lane matmul output).
    """
    y = jnp.dot(p_ref[...], w_ref[...], preferred_element_type=jnp.float32)  # (R2, Cp)
    r = y.shape[0]
    n = o_ref.shape[0]
    rows_per_sample = r // n
    inv_r = 1.0 / r
    mean = jnp.sum(y, axis=0, keepdims=True) * inv_r
    var = jnp.maximum(jnp.sum(y * y, axis=0, keepdims=True) * inv_r - mean * mean, 0.0)
    scale = jax.lax.rsqrt(var + EPS) * g_ref[...]
    a2 = jnp.maximum((y - mean) * scale + b_ref[...], 0.0)                   # (R2, Cp)

    contrib = jnp.sum(a2 * w3_ref[...], axis=1, keepdims=True)               # (R2, 1)
    for i in range(n):                                                       # static N
        piece = jnp.sum(
            contrib[i * rows_per_sample:(i + 1) * rows_per_sample, :],
            axis=0, keepdims=True)                                           # (1, 1)
        o_ref[i:i + 1, :] = jax.nn.sigmoid(piece + b3_ref[...])


# ------------------------------------------------------------------- glue ---
def _im2col_nhwc(x, kh, kw, stride, pad):
    """NHWC x -> (N*OH*OW, KH*KW*C) patches; column order (kh, kw, c)."""
    n, h, w, c = x.shape
    xp = jnp.pad(x, ((0, 0), (pad, pad), (pad, pad), (0, 0)))
    oh = (h + 2 * pad - kh) // stride + 1
    ow = (w + 2 * pad - kw) // stride + 1
    cols = [xp[:, i:i + stride * (oh - 1) + 1:stride,
               j:j + stride * (ow - 1) + 1:stride, :]
            for i in range(kh) for j in range(kw)]          # each (n, oh, ow, c)
    patches = jnp.stack(cols, axis=3)                       # (n, oh, ow, kh*kw, c)
    return patches.reshape(n * oh * ow, kh * kw * c), oh, ow


def _weight_matrix(w):
    """(Cout, Cin, KH, KW) -> (KH*KW*Cin, Cout), matching _im2col_nhwc columns."""
    cout, cin, kh, kw = w.shape
    return w.transpose(2, 3, 1, 0).reshape(kh * kw * cin, cout)


@jax.jit
def classifier_forward(x, params):
    """x: (N, 3, H, W) float32 NCHW -> (N, 1) predictions."""
    f32, bf16 = jnp.float32, jnp.bfloat16
    n = x.shape[0]
    xh = jnp.transpose(x, (0, 2, 3, 1)).astype(f32)         # NHWC once, stays NHWC

    # ------------- layer 1: conv(3->32, 5x5, s4, p2) + BN + ReLU ------------
    p1, oh1, ow1 = _im2col_nhwc(xh, 5, 5, 4, 2)             # (N*OH1*OW1, 75)
    k1, c1 = p1.shape[1], params["w1"].shape[0]
    k1p, c1p = _round_up(k1, 128), _round_up(c1, 128)
    p1p = jnp.pad(p1, ((0, 0), (0, k1p - k1))).astype(bf16)
    w1p = jnp.pad(_weight_matrix(params["w1"]),
                  ((0, k1p - k1), (0, c1p - c1))).astype(bf16)
    g1p = jnp.pad(params["g1"], (0, c1p - c1)).reshape(1, c1p).astype(f32)
    bt1p = jnp.pad(params["bt1"], (0, c1p - c1)).reshape(1, c1p).astype(f32)
    r1 = p1p.shape[0]

    a1 = pl.pallas_call(
        _conv_bn_relu_kernel,
        out_shape=jax.ShapeDtypeStruct((r1, c1p), f32),
        in_specs=[_VMEM] * 4,
        out_specs=_VMEM,
        cost_estimate=pl.CostEstimate(
            flops=2 * r1 * k1p * c1p + 8 * r1 * c1p,
            transcendentals=c1p,
            bytes_accessed=r1 * k1p * 2 + k1p * c1p * 2 + 2 * c1p * 4 + r1 * c1p * 4),
    )(p1p, w1p, g1p, bt1p)                                  # (r1, 128) f32, rows (n, oh1, ow1)

    # ------------- layers 2 + 3, fused in one kernel ------------------------
    a1 = a1[:, :c1].reshape(n, oh1, ow1, c1).astype(bf16)   # NHWC, real channels only
    p2, oh2, ow2 = _im2col_nhwc(a1, 5, 5, 4, 2)             # (N*OH2*OW2, 800) bf16
    k2, c2 = p2.shape[1], params["w2"].shape[0]
    c2p = _round_up(c2, 128)
    w2p = jnp.pad(_weight_matrix(params["w2"]), ((0, 0), (0, c2p - c2))).astype(bf16)
    g2p = jnp.pad(params["g2"], (0, c2p - c2)).reshape(1, c2p).astype(f32)
    bt2p = jnp.pad(params["bt2"], (0, c2p - c2)).reshape(1, c2p).astype(f32)

    # conv3 (c2 -> 1, kernel oh2 x ow2, s1, p0) reduces the whole conv2 map.
    kh3, kw3 = params["w3"].shape[2], params["w3"].shape[3]
    assert (kh3, kw3) == (oh2, ow2), "conv3 must cover the full conv2 output map"
    w3t = params["w3"][0].transpose(1, 2, 0).reshape(kh3 * kw3, c2)              # (16, 64)
    w3t = jnp.tile(jnp.pad(w3t, ((0, 0), (0, c2p - c2))), (n, 1)).astype(f32)    # (R2, 128)
    b3 = params["b3"].reshape(1, 1).astype(f32)

    r2 = p2.shape[0]
    out = pl.pallas_call(
        _conv_bn_relu_head_kernel,
        out_shape=jax.ShapeDtypeStruct((n, 1), f32),
        in_specs=[_VMEM] * 6,
        out_specs=_VMEM,
        cost_estimate=pl.CostEstimate(
            flops=2 * r2 * k2 * c2p + 11 * r2 * c2p,
            transcendentals=c2p + n,
            bytes_accessed=r2 * k2 * 2 + k2 * c2p * 2 + 2 * c2p * 4
                           + r2 * c2p * 4 + 4 + n * 4),
    )(p2, w2p, g2p, bt2p, w3t, b3)
    return out                                              # (N, 1)


# ---------------------------------------------------------- plain-JAX ref ---
def _ref_forward(x, p):
    def conv(x, w, b, stride, pad):
        y = jax.lax.conv_general_dilated(
            x, w, window_strides=(stride, stride),
            padding=[(pad, pad), (pad, pad)],
            dimension_numbers=("NCHW", "OIHW", "NCHW"),
            precision=jax.lax.Precision.HIGHEST)
        return y + b.reshape(1, -1, 1, 1)

    def bn_relu(y, g, bt):
        mean = jnp.mean(y, axis=(0, 2, 3), keepdims=True)
        var = jnp.mean(jnp.square(y - mean), axis=(0, 2, 3), keepdims=True)
        y = (y - mean) * jax.lax.rsqrt(var + EPS)
        return jnp.maximum(y * g.reshape(1, -1, 1, 1) + bt.reshape(1, -1, 1, 1), 0.0)

    h = bn_relu(conv(x, p["w1"], p["b1"], 4, 2), p["g1"], p["bt1"])
    h = bn_relu(conv(h, p["w2"], p["b2"], 4, 2), p["g2"], p["bt2"])
    h = jax.nn.sigmoid(conv(h, p["w3"], p["b3"], 1, 0))
    return h.reshape(x.shape[0], -1)


# ------------------------------------------------------------------- main ---
if __name__ == "__main__":
    key = jax.random.PRNGKey(0)
    ks = jax.random.split(key, 12)

    N, C, H, W = 2, 3, 64, 64  # 64x64 -> 16x16 -> 4x4 -> 1x1 (conv3 is 4x4, no pad)
    x = jax.random.normal(ks[0], (N, C, H, W), jnp.float32)

    params = {
        "w1": 0.1 * jax.random.normal(ks[1], (32, 3, 5, 5), jnp.float32),
        "b1": 0.1 * jax.random.normal(ks[2], (32,), jnp.float32),   # cancelled by BN (kept for reference)
        "g1": 1.0 + 0.1 * jax.random.normal(ks[3], (32,), jnp.float32),
        "bt1": 0.1 * jax.random.normal(ks[4], (32,), jnp.float32),
        "w2": 0.1 * jax.random.normal(ks[5], (64, 32, 5, 5), jnp.float32),
        "b2": 0.1 * jax.random.normal(ks[6], (64,), jnp.float32),   # cancelled by BN (kept for reference)
        "g2": 1.0 + 0.1 * jax.random.normal(ks[7], (64,), jnp.float32),
        "bt2": 0.1 * jax.random.normal(ks[8], (64,), jnp.float32),
        "w3": 0.1 * jax.random.normal(ks[9], (1, 64, 4, 4), jnp.float32),
        "b3": 0.1 * jax.random.normal(ks[10], (1,), jnp.float32),
    }

    preds = jax.block_until_ready(classifier_forward(x, params))
    assert preds.shape == (N, 1), preds.shape

    ref = jax.block_until_ready(_ref_forward(x, params))
    # bf16 MXU operands vs. an all-f32 HIGHEST-precision reference.
    assert jnp.allclose(preds, ref, atol=2e-2, rtol=2e-2), (preds, ref)

    print("KERNEL_OK")
</pallas_src>

<mosaic_0001>
module attributes {stable_mosaic.version = 11 : i64} {
  func.func @_conv_bn_relu_kernel(%arg0: memref<512x128xbf16, #tpu.memory_space<vmem>>, %arg1: memref<128x128xbf16, #tpu.memory_space<vmem>>, %arg2: memref<1x128xf32, #tpu.memory_space<vmem>>, %arg3: memref<1x128xf32, #tpu.memory_space<vmem>>, %arg4: memref<512x128xf32, #tpu.memory_space<vmem>>) attributes {dimension_semantics = [], scalar_prefetch = 0 : i64, scratch_operands = 0 : i64, tpu.core_type = #tpu.core_type<tc>} {
    %c0 = arith.constant 0 : index
    %c0_0 = arith.constant 0 : index
    %0 = vector.load %arg0[%c0, %c0_0] : memref<512x128xbf16, #tpu.memory_space<vmem>>, vector<512x128xbf16>
    %c0_1 = arith.constant 0 : index
    %c0_2 = arith.constant 0 : index
    %1 = vector.load %arg1[%c0_1, %c0_2] : memref<128x128xbf16, #tpu.memory_space<vmem>>, vector<128x128xbf16>
    %cst = arith.constant dense<0.000000e+00> : vector<512x128xf32>
    %2 = tpu.matmul %0, %1, %cst {dimension_numbers = #tpu.dot_dimension_numbers<[1], [0], [0], [1], [0, 0, 1, 1], [], []>} : vector<512x128xbf16>, vector<128x128xbf16>, vector<512x128xf32> -> vector<512x128xf32>
    %cst_3 = arith.constant dense<0.000000e+00> : vector<128xf32>
    %3 = vector.multi_reduction <add>, %2, %cst_3 [0] : vector<512x128xf32> to vector<128xf32>
    %4 = vector.shape_cast %3 : vector<128xf32> to vector<1x128xf32>
    %cst_4 = arith.constant 0.001953125 : f32
    %5 = vector.broadcast %cst_4 : f32 to vector<1x128xf32>
    %6 = arith.mulf %4, %5 : vector<1x128xf32>
    %7 = arith.mulf %2, %2 : vector<512x128xf32>
    %cst_5 = arith.constant dense<0.000000e+00> : vector<128xf32>
    %8 = vector.multi_reduction <add>, %7, %cst_5 [0] : vector<512x128xf32> to vector<128xf32>
    %9 = vector.shape_cast %8 : vector<128xf32> to vector<1x128xf32>
    %cst_6 = arith.constant 0.001953125 : f32
    %10 = vector.broadcast %cst_6 : f32 to vector<1x128xf32>
    %11 = arith.mulf %9, %10 : vector<1x128xf32>
    %12 = arith.mulf %6, %6 : vector<1x128xf32>
    %13 = arith.subf %11, %12 : vector<1x128xf32>
    %cst_7 = arith.constant 0.000000e+00 : f32
    %14 = vector.broadcast %cst_7 : f32 to vector<1x128xf32>
    %15 = arith.maximumf %13, %14 : vector<1x128xf32>
    %cst_8 = arith.constant 9.99999974E-6 : f32
    %16 = vector.broadcast %cst_8 : f32 to vector<1x128xf32>
    %17 = arith.addf %15, %16 : vector<1x128xf32>
    %18 = math.rsqrt %17 : vector<1x128xf32>
    %c0_9 = arith.constant 0 : index
    %c0_10 = arith.constant 0 : index
    %19 = vector.load %arg2[%c0_9, %c0_10] : memref<1x128xf32, #tpu.memory_space<vmem>>, vector<1x128xf32>
    %20 = arith.mulf %18, %19 : vector<1x128xf32>
    %21 = vector.broadcast %6 : vector<1x128xf32> to vector<512x128xf32>
    %22 = arith.subf %2, %21 : vector<512x128xf32>
    %23 = vector.broadcast %20 : vector<1x128xf32> to vector<512x128xf32>
    %24 = arith.mulf %22, %23 : vector<512x128xf32>
    %c0_11 = arith.constant 0 : index
    %c0_12 = arith.constant 0 : index
    %25 = vector.load %arg3[%c0_11, %c0_12] : memref<1x128xf32, #tpu.memory_space<vmem>>, vector<1x128xf32>
    %26 = vector.broadcast %25 : vector<1x128xf32> to vector<512x128xf32>
    %27 = arith.addf %24, %26 : vector<512x128xf32>
    %cst_13 = arith.constant 0.000000e+00 : f32
    %28 = vector.broadcast %cst_13 : f32 to vector<512x128xf32>
    %29 = arith.maximumf %27, %28 : vector<512x128xf32>
    %c0_14 = arith.constant 0 : index
    %c0_15 = arith.constant 0 : index
    %30 = vector.load %arg4[%c0_14, %c0_15] : memref<512x128xf32, #tpu.memory_space<vmem>>, vector<512x128xf32>
    tpu.vector_store %arg4[%c0_14, %c0_15], %29 {strides = array<i32>} : memref<512x128xf32, #tpu.memory_space<vmem>>, vector<512x128xf32>,
    return
  }
}

module attributes {stable_mosaic.version = 11 : i64} {
  func.func @_conv_bn_relu_head_kernel(%arg0: memref<32x800xbf16, #tpu.memory_space<vmem>>, %arg1: memref<800x128xbf16, #tpu.memory_space<vmem>>, %arg2: memref<1x128xf32, #tpu.memory_space<vmem>>, %arg3: memref<1x128xf32, #tpu.memory_space<vmem>>, %arg4: memref<32x128xf32, #tpu.memory_space<vmem>>, %arg5: memref<1x1xf32, #tpu.memory_space<vmem>>, %arg6: memref<2x1xf32, #tpu.memory_space<vmem>>) attributes {dimension_semantics = [], scalar_prefetch = 0 : i64, scratch_operands = 0 : i64, tpu.core_type = #tpu.core_type<tc>} {
    %c0 = arith.constant 0 : index
    %c0_0 = arith.constant 0 : index
    %0 = vector.load %arg0[%c0, %c0_0] : memref<32x800xbf16, #tpu.memory_space<vmem>>, vector<32x800xbf16>
    %c0_1 = arith.constant 0 : index
    %c0_2 = arith.constant 0 : index
    %1 = vector.load %arg1[%c0_1, %c0_2] : memref<800x128xbf16, #tpu.memory_space<vmem>>, vector<800x128xbf16>
    %cst = arith.constant dense<0.000000e+00> : vector<32x128xf32>
    %2 = tpu.matmul %0, %1, %cst {dimension_numbers = #tpu.dot_dimension_numbers<[1], [0], [0], [1], [0, 0, 1, 1], [], []>} : vector<32x800xbf16>, vector<800x128xbf16>, vector<32x128xf32> -> vector<32x128xf32>
    %cst_3 = arith.constant dense<0.000000e+00> : vector<128xf32>
    %3 = vector.multi_reduction <add>, %2, %cst_3 [0] : vector<32x128xf32> to vector<128xf32>
    %4 = vector.shape_cast %3 : vector<128xf32> to vector<1x128xf32>
    %cst_4 = arith.constant 3.125000e-02 : f32
    %5 = vector.broadcast %cst_4 : f32 to vector<1x128xf32>
    %6 = arith.mulf %4, %5 : vector<1x128xf32>
    %7 = arith.mulf %2, %2 : vector<32x128xf32>
    %cst_5 = arith.constant dense<0.000000e+00> : vector<128xf32>
    %8 = vector.multi_reduction <add>, %7, %cst_5 [0] : vector<32x128xf32> to vector<128xf32>
    %9 = vector.shape_cast %8 : vector<128xf32> to vector<1x128xf32>
    %cst_6 = arith.constant 3.125000e-02 : f32
    %10 = vector.broadcast %cst_6 : f32 to vector<1x128xf32>
    %11 = arith.mulf %9, %10 : vector<1x128xf32>
    %12 = arith.mulf %6, %6 : vector<1x128xf32>
    %13 = arith.subf %11, %12 : vector<1x128xf32>
    %cst_7 = arith.constant 0.000000e+00 : f32
    %14 = vector.broadcast %cst_7 : f32 to vector<1x128xf32>
    %15 = arith.maximumf %13, %14 : vector<1x128xf32>
    %cst_8 = arith.constant 9.99999974E-6 : f32
    %16 = vector.broadcast %cst_8 : f32 to vector<1x128xf32>
    %17 = arith.addf %15, %16 : vector<1x128xf32>
    %18 = math.rsqrt %17 : vector<1x128xf32>
    %c0_9 = arith.constant 0 : index
    %c0_10 = arith.constant 0 : index
    %19 = vector.load %arg2[%c0_9, %c0_10] : memref<1x128xf32, #tpu.memory_space<vmem>>, vector<1x128xf32>
    %20 = arith.mulf %18, %19 : vector<1x128xf32>
    %21 = vector.broadcast %6 : vector<1x128xf32> to vector<32x128xf32>
    %22 = arith.subf %2, %21 : vector<32x128xf32>
    %23 = vector.broadcast %20 : vector<1x128xf32> to vector<32x128xf32>
    %24 = arith.mulf %22, %23 : vector<32x128xf32>
    %c0_11 = arith.constant 0 : index
    %c0_12 = arith.constant 0 : index
    %25 = vector.load %arg3[%c0_11, %c0_12] : memref<1x128xf32, #tpu.memory_space<vmem>>, vector<1x128xf32>
    %26 = vector.broadcast %25 : vector<1x128xf32> to vector<32x128xf32>
    %27 = arith.addf %24, %26 : vector<32x128xf32>
    %cst_13 = arith.constant 0.000000e+00 : f32
    %28 = vector.broadcast %cst_13 : f32 to vector<32x128xf32>
    %29 = arith.maximumf %27, %28 : vector<32x128xf32>
    %c0_14 = arith.constant 0 : index
    %c0_15 = arith.constant 0 : index
    %30 = vector.load %arg4[%c0_14, %c0_15] : memref<32x128xf32, #tpu.memory_space<vmem>>, vector<32x128xf32>
    %31 = arith.mulf %29, %30 : vector<32x128xf32>
    %cst_16 = arith.constant dense<0.000000e+00> : vector<32xf32>
    %32 = vector.multi_reduction <add>, %31, %cst_16 [1] : vector<32x128xf32> to vector<32xf32>
    %33 = vector.shape_cast %32 : vector<32xf32> to vector<32x1xf32>
    %34 = vector.extract_strided_slice %33 {offsets = [0, 0], sizes = [16, 1], strides = [1, 1]} : vector<32x1xf32> to vector<16x1xf32>
    %cst_17 = arith.constant dense<0.000000e+00> : vector<1xf32>
    %35 = vector.multi_reduction <add>, %34, %cst_17 [0] : vector<16x1xf32> to vector<1xf32>
    %36 = vector.shape_cast %35 : vector<1xf32> to vector<1x1xf32>
    %c0_18 = arith.constant 0 : index
    %c0_19 = arith.constant 0 : index
    %37 = vector.load %arg5[%c0_18, %c0_19] : memref<1x1xf32, #tpu.memory_space<vmem>>, vector<1x1xf32>
    %38 = arith.addf %36, %37 : vector<1x1xf32>
    %39 = arith.negf %38 : vector<1x1xf32>
    %40 = math.exp %39 : vector<1x1xf32>
    %cst_20 = arith.constant 1.000000e+00 : f32
    %41 = vector.broadcast %cst_20 : f32 to vector<1x1xf32>
    %42 = arith.addf %41, %40 : vector<1x1xf32>
    %43 = arith.divf %41, %42 : vector<1x1xf32>
    %c0_21 = arith.constant 0 : index
    %c0_22 = arith.constant 0 : index
    %44 = vector.load %arg6[%c0_21, %c0_22] : memref<2x1xf32, #tpu.memory_space<vmem>>, vector<1x1xf32>
    tpu.vector_store %arg6[%c0_21, %c0_22], %43 {strides = array<i32>} : memref<2x1xf32, #tpu.memory_space<vmem>>, vector<1x1xf32>,
    %45 = vector.extract_strided_slice %33 {offsets = [16, 0], sizes = [16, 1], strides = [1, 1]} : vector<32x1xf32> to vector<16x1xf32>
    %cst_23 = arith.constant dense<0.000000e+00> : vector<1xf32>
    %46 = vector.multi_reduction <add>, %45, %cst_23 [0] : vector<16x1xf32> to vector<1xf32>
    %47 = vector.shape_cast %46 : vector<1xf32> to vector<1x1xf32>
    %c0_24 = arith.constant 0 : index
    %c0_25 = arith.constant 0 : index
    %48 = vector.load %arg5[%c0_24, %c0_25] : memref<1x1xf32, #tpu.memory_space<vmem>>, vector<1x1xf32>
    %49 = arith.addf %47, %48 : vector<1x1xf32>
    %50 = arith.negf %49 : vector<1x1xf32>
    %51 = math.exp %50 : vector<1x1xf32>
    %cst_26 = arith.constant 1.000000e+00 : f32
    %52 = vector.broadcast %cst_26 : f32 to vector<1x1xf32>
    %53 = arith.addf %52, %51 : vector<1x1xf32>
    %54 = arith.divf %52, %53 : vector<1x1xf32>
    %c1 = arith.constant 1 : index
    %c0_27 = arith.constant 0 : index
    %55 = vector.load %arg6[%c1, %c0_27] : memref<2x1xf32, #tpu.memory_space<vmem>>, vector<1x1xf32>
    tpu.vector_store %arg6[%c1, %c0_27], %54 {strides = array<i32>} : memref<2x1xf32, #tpu.memory_space<vmem>>, vector<1x1xf32>,
    return
  }
}

</mosaic_0001>

<bundles_post_ra>
// kernel: classifier_forward.2
= control target key start
LH: loop header
LB: loop body
LE: loop exit
PB: predicated region body
PF: predicated region fallthrough
CT: control target
= control target key end

     0   :  { %s2900_s1 = inlined_call_operand.vmem [shape: bf16[128,128], index: 1, kind: input, shape index: {}]   ;;  %s2901_s0 = inlined_call_operand.vmem [shape: bf16[512,128], index: 0, kind: input, shape index: {}]   ;;  %s2902_s2 = inlined_call_operand.vmem [shape: f32[1,128], index: 2, kind: input, shape index: {}]   ;;  %s2903_s3 = inlined_call_operand.vmem [shape: f32[1,128], index: 3, kind: input, shape index: {}]   ;;  %s2904_s4 = inlined_call_operand.vmem [shape: f32[512,128], index: 4, kind: output, shape index: {}]  }
   0x1   :  { %v1350_v0 = vld [vmem:[%s2900_s1 + $0x38] sm:$0xff]   ;;  %v1351_v1 = vld [vmem:[%s2900_s1 + $0x30] sm:$0xff]   ;;  %v1352_v2 = vld [vmem:[%s2900_s1 + $0x28] sm:$0xff]  }
   0x2   :  { %1254 = vmatprep.subr.bf16.mxu0 %v1350_v0  ;;  %1334 = vmatprep.subr.bf16.mxu1 %v1350_v0  ;;  %v1353_v3 = vld [vmem:[%s2900_s1 + $0x20] sm:$0xff]   ;;  %v1354_v5 = vld [vmem:[%s2900_s1 + $0x18] sm:$0xff]   ;;  %v1355_v6 = vld [vmem:[%s2900_s1 + $0x10] sm:$0xff]  }
   0x3   :  { %1255 = vmatpush3.bf16.msra.mxu0 %v1350_v0  ;;  %1342 = vmatpush3.bf16.msra.mxu1 %v1350_v0  ;;  %v1358_v4 = vld [vmem:[%s2901_s0] sm:$0xff]   ;;  %v1356_v7 = vld [vmem:[%s2900_s1 + $0x8] sm:$0xff]   ;;  %v1360_v11 = vld [vmem:[%s2901_s0 + $0x10] sm:$0xff]  }
   0x4   :  { %1256 = vmatprep.subr.bf16.mxu0 %v1351_v1  ;;  %1335 = vmatprep.subr.bf16.mxu1 %v1351_v1  ;;  %v1357_v8 = vld [vmem:[%s2900_s1] sm:$0xff]   ;;  %v1359_v10 = vld [vmem:[%s2901_s0 + $0x8] sm:$0xff]   ;;  %v1376_v13 = vld [vmem:[%s2901_s0 + $0x90] sm:$0xff]  }
   0x5   :  { %1270 = vmatprep.mubr.bf16.mxu0 %v1358_v4  ;;  %v1374_v9 = vld [vmem:[%s2901_s0 + $0x80] sm:$0xff]   ;;  %v1375_v12 = vld [vmem:[%s2901_s0 + $0x88] sm:$0xff]   ;;  %v1361_v14 = vld [vmem:[%s2901_s0 + $0x18] sm:$0xff]  }
   0x6   :  { %1302 = vmatprep.mubr.bf16.mxu1 %v1374_v9  ;;  %v1362_v15 = vld [vmem:[%s2901_s0 + $0x20] sm:$0xff]   ;;  %v1377_v16 = vld [vmem:[%s2901_s0 + $0x98] sm:$0xff]   ;;  %v1363_v18 = vld [vmem:[%s2901_s0 + $0x28] sm:$0xff]  }
   0x7   :  { %1257 = vmatpush3.bf16.msra.mxu0 %v1351_v1  ;;  %1343 = vmatpush3.bf16.msra.mxu1 %v1351_v1  ;;  %v1378_v17 = vld [vmem:[%s2901_s0 + $0xa0] sm:$0xff]   ;;  %v1379_v19 = vld [vmem:[%s2901_s0 + $0xa8] sm:$0xff]   ;;  %v1364_v20 = vld [vmem:[%s2901_s0 + $0x30] sm:$0xff]  }
   0x8   :  { %1258 = vmatprep.subr.bf16.mxu0 %v1352_v2  ;;  %1336 = vmatprep.subr.bf16.mxu1 %v1352_v2  ;;  %v1380_v21 = vld [vmem:[%s2901_s0 + $0xb0] sm:$0xff]   ;;  %v1365_v22 = vld [vmem:[%s2901_s0 + $0x38] sm:$0xff]   ;;  %v1366_v24 = vld [vmem:[%s2901_s0 + $0x40] sm:$0xff]  }
   0x9   :  { %v1381_v23 = vld [vmem:[%s2901_s0 + $0xb8] sm:$0xff]   ;;  %v1382_v25 = vld [vmem:[%s2901_s0 + $0xc0] sm:$0xff]   ;;  %v1367_v26 = vld [vmem:[%s2901_s0 + $0x48] sm:$0xff]  }
   0xa   :  { %v1383_v27 = vld [vmem:[%s2901_s0 + $0xc8] sm:$0xff]   ;;  %v1368_v28 = vld [vmem:[%s2901_s0 + $0x50] sm:$0xff]   ;;  %v1369_v30 = vld [vmem:[%s2901_s0 + $0x58] sm:$0xff]  }
   0xb   :  { %1259 = vmatpush3.bf16.msra.mxu0 %v1352_v2  ;;  %1344 = vmatpush3.bf16.msra.mxu1 %v1352_v2  ;;  %v1384_v29 = vld [vmem:[%s2901_s0 + $0xd0] sm:$0xff]   ;;  %v1385_v31 = vld [vmem:[%s2901_s0 + $0xd8] sm:$0xff]   ;;  %v1370_v32 = vld [vmem:[%s2901_s0 + $0x60] sm:$0xff]  }
   0xc   :  { %1260 = vmatprep.subr.bf16.mxu0 %v1353_v3  ;;  %1337 = vmatprep.subr.bf16.mxu1 %v1353_v3  ;;  %v1386_v33 = vld [vmem:[%s2901_s0 + $0xe0] sm:$0xff]   ;;  %v1371_v34 = vld [vmem:[%s2901_s0 + $0x68] sm:$0xff]   ;;  %v1372_v36 = vld [vmem:[%s2901_s0 + $0x70] sm:$0xff]  }
   0xd   :  { %v1387_v35 = vld [vmem:[%s2901_s0 + $0xe8] sm:$0xff]   ;;  %v1388_v37 = vld [vmem:[%s2901_s0 + $0xf0] sm:$0xff]   ;;  %v1373_v38 = vld [vmem:[%s2901_s0 + $0x78] sm:$0xff]  }
   0xe   :  { %v1389_v39 = vld [vmem:[%s2901_s0 + $0xf8] sm:$0xff]  }
   0xf   :  { %1261 = vmatpush3.bf16.msra.mxu0 %v1353_v3  ;;  %1345 = vmatpush3.bf16.msra.mxu1 %v1353_v3 }
  0x10   :  { %1262 = vmatprep.subr.bf16.mxu0 %v1354_v5  ;;  %1338 = vmatprep.subr.bf16.mxu1 %v1354_v5 }
  0x13   :  { %1263 = vmatpush3.bf16.msra.mxu0 %v1354_v5  ;;  %1346 = vmatpush3.bf16.msra.mxu1 %v1354_v5 }
  0x14   :  { %1264 = vmatprep.subr.bf16.mxu0 %v1355_v6  ;;  %1339 = vmatprep.subr.bf16.mxu1 %v1355_v6 }
  0x17   :  { %1265 = vmatpush3.bf16.msra.mxu0 %v1355_v6  ;;  %1347 = vmatpush3.bf16.msra.mxu1 %v1355_v6 }
  0x18   :  { %1266 = vmatprep.subr.bf16.mxu0 %v1356_v7  ;;  %1340 = vmatprep.subr.bf16.mxu1 %v1356_v7 }
  0x1b   :  { %1267 = vmatpush3.bf16.msra.mxu0 %v1356_v7  ;;  %1348 = vmatpush3.bf16.msra.mxu1 %v1356_v7 }
  0x1c   :  { %1268 = vmatprep.subr.bf16.mxu0 %v1357_v8  ;;  %1341 = vmatprep.subr.bf16.mxu1 %v1357_v8 }
  0x1f   :  { %1269 = vmatpush3.bf16.msra.mxu0 %v1357_v8  ;;  %1349 = vmatpush3.bf16.msra.mxu1 %v1357_v8 }
  0x22   :  { %1271 = vmatmul.mubr.bf16.vlgmr.msra.gmra.mxu0 %v1359_v10  ;;  %1303 = vmatmul.mubr.bf16.vlgmr.msra.gmra.mxu1 %v1375_v12 }
  0x23   :  { %1274 = vmatprep.mubr.bf16.mxu0 %v1360_v11  ;;  %1306 = vmatprep.mubr.bf16.mxu1 %v1376_v13 }
  0x2a   :  { %1275 = vmatmul.mubr.bf16.gmra.mxu0 %v1361_v14  ;;  %1307 = vmatmul.mubr.bf16.gmra.mxu1 %v1377_v16 }
  0x2b   :  { %1278 = vmatprep.mubr.bf16.mxu0 %v1362_v15  ;;  %1310 = vmatprep.mubr.bf16.mxu1 %v1378_v17 }
  0x32   :  { %1279 = vmatmul.mubr.bf16.gmra.mxu0 %v1363_v18  ;;  %1311 = vmatmul.mubr.bf16.gmra.mxu1 %v1379_v19 }
  0x33   :  { %1282 = vmatprep.mubr.bf16.mxu0 %v1364_v20  ;;  %1314 = vmatprep.mubr.bf16.mxu1 %v1380_v21 }
  0x3a   :  { %1283 = vmatmul.mubr.bf16.gmra.mxu0 %v1365_v22  ;;  %1315 = vmatmul.mubr.bf16.gmra.mxu1 %v1381_v23 }
  0x3b   :  { %1286 = vmatprep.mubr.bf16.mxu0 %v1366_v24  ;;  %1318 = vmatprep.mubr.bf16.mxu1 %v1382_v25 }
  0x42   :  { %1287 = vmatmul.mubr.bf16.gmra.mxu0 %v1367_v26  ;;  %1319 = vmatmul.mubr.bf16.gmra.mxu1 %v1383_v27 }
  0x43   :  { %1290 = vmatprep.mubr.bf16.mxu0 %v1368_v28  ;;  %1322 = vmatprep.mubr.bf16.mxu1 %v1384_v29 }
  0x4a   :  { %1291 = vmatmul.mubr.bf16.gmra.mxu0 %v1369_v30  ;;  %1323 = vmatmul.mubr.bf16.gmra.mxu1 %v1385_v31 }
  0x4b   :  { %1294 = vmatprep.mubr.bf16.mxu0 %v1370_v32  ;;  %1326 = vmatprep.mubr.bf16.mxu1 %v1386_v33 }
  0x52   :  { %1295 = vmatmul.mubr.bf16.gmra.mxu0 %v1371_v34  ;;  %1327 = vmatmul.mubr.bf16.gmra.mxu1 %v1387_v35 }
  0x53   :  { %1298 = vmatprep.mubr.bf16.mxu0 %v1372_v36  ;;  %1330 = vmatprep.mubr.bf16.mxu1 %v1388_v37 }
  0x5a   :  { %1299 = vmatmul.mubr.bf16.gmra.mxu0 %v1373_v38  ;;  %1331 = vmatmul.mubr.bf16.gmra.mxu1 %v1389_v39 }
  0xe2   :  { %v1537_v40 = vpop.f32.mrf.mxu0  ;;  %v1539_v41 = vpop.f32.mrf.mxu1 }
  0xe3   :  { %v699_v51 = vmul.f32 %v1537_v40, %v1537_v40 }
  0xe4   :  { %v1541_v42 = vpop.f32.mrf.mxu0  ;;  %v1545_v44 = vpop.f32.mrf.mxu1 }
  0xe5   :  { %2950 = vst [vmem:[#allocation2_spill] sm:$0xff] %v1545_v44  ;;  %v697_v46 = vmul.f32 %v1541_v42, %v1541_v42 }
  0xe6   :  { %v1543_v43 = vpop.f32.mrf.mxu0  ;;  %v1557_v50 = vpop.f32.mrf.mxu1 }
  0xe7   :  { %v700_v55 = vmul.f32 %v1543_v43, %v1543_v43 }
  0xe8   :  { %v1547_v45 = vpop.f32.mrf.mxu0  ;;  %v1569_v59 = vpop.f32.mrf.mxu1 }
  0xe9   :  { %v627_v47 = vadd.f32 %v1547_v45, %v1541_v42  ;;  %v698_v48 = vmul.f32 %v1547_v45, %v1547_v45  ;;  %2951 = vst [vmem:[#allocation3_spill] sm:$0xff] %v1569_v59 }
  0xea   :  { %v1555_v49 = vpop.f32.mrf.mxu0  ;;  %v1581_v4 = vpop.f32.mrf.mxu1 }
  0xeb   :  { %v628_v52 = vadd.f32 %v1537_v40, %v627_v47  ;;  %v761_v53 = vadd.f32 %v698_v48, %v697_v46  ;;  %v703_v5 = vmul.f32 %v1555_v49, %v1555_v49 }
  0xec   :  { %v1562_v54 = vpop.f32.mrf.mxu0  ;;  %v1593_v13 = vpop.f32.mrf.mxu1 }
  0xed   :  { %v762_v56 = vadd.f32 %v761_v53, %v699_v51  ;;  %v629_v57 = vadd.f32 %v1543_v43, %v628_v52  ;;  %v701_v61 = vmul.f32 %v1562_v54, %v1562_v54  ;;  %2952 = vst [vmem:[#allocation4_spill] sm:$0xff] %v1593_v13 }
  0xee   :  { %v1567_v58 = vpop.f32.mrf.mxu0  ;;  %v1605_v22 = vpop.f32.mrf.mxu1 }
  0xef   :  { %v630_v60 = vadd.f32 %v629_v57, %v1562_v54  ;;  %v763_v62 = vadd.f32 %v762_v56, %v700_v55  ;;  %v704_v9 = vmul.f32 %v1567_v58, %v1567_v58 }
  0xf0   :  { %v1574_v63 = vpop.f32.mrf.mxu0  ;;  %v1617_v31 = vpop.f32.mrf.mxu1 }
  0xf1   :  { %v764_v0 = vadd.f32 %v763_v62, %v701_v61  ;;  %v631_v1 = vadd.f32 %v630_v60, %v1574_v63  ;;  %v702_v2 = vmul.f32 %v1574_v63, %v1574_v63  ;;  %2953 = vst [vmem:[#allocation5_spill] sm:$0xff] %v1617_v31 }
  0xf2   :  { %v1579_v3 = vpop.f32.mrf.mxu0  ;;  %v1629_v46 = vpop.f32.mrf.mxu1 }
  0xf3   :  { %v632_v6 = vadd.f32 %v1555_v49, %v631_v1  ;;  %v765_v7 = vadd.f32 %v764_v0, %v702_v2  ;;  %v707_v23 = vmul.f32 %v1579_v3, %v1579_v3 }
  0xf4   :  { %v1586_v8 = vpop.f32.mrf.mxu0  ;;  %v1641_v60 = vpop.f32.mrf.mxu1 }
  0xf5   :  { %v766_v10 = vadd.f32 %v765_v7, %v703_v5  ;;  %v633_v11 = vadd.f32 %v1567_v58, %v632_v6  ;;  %v705_v15 = vmul.f32 %v1586_v8, %v1586_v8  ;;  %2954 = vst [vmem:[#allocation6_spill] sm:$0xff] %v1641_v60 }
  0xf6   :  { %v1591_v12 = vpop.f32.mrf.mxu0 }
  0xf7   :  { %v634_v14 = vadd.f32 %v633_v11, %v1586_v8  ;;  %v767_v16 = vadd.f32 %v766_v10, %v704_v9  ;;  %v708_v27 = vmul.f32 %v1591_v12, %v1591_v12  ;;  %v1653_v9 = vpop.f32.mrf.mxu1 }
  0xf8   :  { %v1598_v17 = vpop.f32.mrf.mxu0  ;;  %2955 = vst [vmem:[#allocation7_spill] sm:$0xff] %v1653_v9 }
  0xf9   :  { %v768_v18 = vadd.f32 %v767_v16, %v705_v15  ;;  %v635_v19 = vadd.f32 %v634_v14, %v1598_v17  ;;  %v706_v20 = vmul.f32 %v1598_v17, %v1598_v17 }
  0xfa   :  { %v1603_v21 = vpop.f32.mrf.mxu0 }
  0xfb   :  { %v636_v24 = vadd.f32 %v1579_v3, %v635_v19  ;;  %v769_v25 = vadd.f32 %v768_v18, %v706_v20  ;;  %v711_v47 = vmul.f32 %v1603_v21, %v1603_v21 }
  0xfc   :  { %v1610_v26 = vpop.f32.mrf.mxu0 }
  0xfd   :  { %v770_v28 = vadd.f32 %v769_v25, %v707_v23  ;;  %v637_v29 = vadd.f32 %v1591_v12, %v636_v24  ;;  %v709_v33 = vmul.f32 %v1610_v26, %v1610_v26  ;;  %v1665_v23 = vpop.f32.mrf.mxu1 }
  0xfe   :  { %v1615_v30 = vpop.f32.mrf.mxu0  ;;  %2956 = vst [vmem:[#allocation8_spill] sm:$0xff] %v1665_v23 }
  0xff   :  { %v638_v32 = vadd.f32 %v637_v29, %v1610_v26  ;;  %v771_v34 = vadd.f32 %v770_v28, %v708_v27  ;;  %v712_v53 = vmul.f32 %v1615_v30, %v1615_v30 }
 0x100   :  { %v1622_v35 = vpop.f32.mrf.mxu0 }
 0x101   :  { %v772_v36 = vadd.f32 %v771_v34, %v709_v33  ;;  %v639_v37 = vadd.f32 %v638_v32, %v1622_v35  ;;  %v710_v38 = vmul.f32 %v1622_v35, %v1622_v35 }
 0x102   :  { %v1627_v39 = vpop.f32.mrf.mxu0 }
 0x103   :  { %v640_v48 = vadd.f32 %v1603_v21, %v639_v37  ;;  %v773_v51 = vadd.f32 %v772_v36, %v710_v38  ;;  %v715_v10 = vmul.f32 %v1627_v39, %v1627_v39  ;;  %v1677_v36 = vpop.f32.mrf.mxu1 }
 0x104   :  { %v1634_v52 = vpop.f32.mrf.mxu0  ;;  %2957 = vst [vmem:[#allocation9_spill] sm:$0xff] %v1677_v36 }
 0x105   :  { %v774_v55 = vadd.f32 %v773_v51, %v711_v47  ;;  %v641_v56 = vadd.f32 %v1615_v30, %v640_v48  ;;  %v713_v62 = vmul.f32 %v1634_v52, %v1634_v52 }
 0x106   :  { %v1639_v57 = vpop.f32.mrf.mxu0 }
 0x107   :  { %v642_v61 = vadd.f32 %v641_v56, %v1634_v52  ;;  %v775_v0 = vadd.f32 %v774_v55, %v712_v53  ;;  %v716_v16 = vmul.f32 %v1639_v57, %v1639_v57 }
 0x108   :  { %v1646_v1 = vpop.f32.mrf.mxu0 }
 0x109   :  { %v776_v2 = vadd.f32 %v775_v0, %v713_v62  ;;  %v643_v5 = vadd.f32 %v642_v61, %v1646_v1  ;;  %v714_v6 = vmul.f32 %v1646_v1, %v1646_v1  ;;  %v1689_v61 = vpop.f32.mrf.mxu1 }
 0x10a   :  { %v1651_v7 = vpop.f32.mrf.mxu0  ;;  %2958 = vst [vmem:[#allocation10_spill] sm:$0xff] %v1689_v61 }
 0x10b   :  { %v644_v11 = vadd.f32 %v1627_v39, %v643_v5  ;;  %v777_v14 = vadd.f32 %v776_v2, %v714_v6  ;;  %v719_v37 = vmul.f32 %v1651_v7, %v1651_v7 }
 0x10c   :  { %v1658_v15 = vpop.f32.mrf.mxu0 }
 0x10d   :  { %v778_v18 = vadd.f32 %v777_v14, %v715_v10  ;;  %v645_v19 = vadd.f32 %v1639_v57, %v644_v11  ;;  %v717_v25 = vmul.f32 %v1658_v15, %v1658_v15 }
 0x10e   :  { %v1663_v20 = vpop.f32.mrf.mxu0 }
 0x10f   :  { %v646_v24 = vadd.f32 %v645_v19, %v1658_v15  ;;  %v779_v27 = vadd.f32 %v778_v18, %v716_v16  ;;  %v720_v51 = vmul.f32 %v1663_v20, %v1663_v20  ;;  %v1701_v16 = vpop.f32.mrf.mxu1 }
 0x110   :  { %v1670_v28 = vpop.f32.mrf.mxu0  ;;  %2959 = vst [vmem:[#allocation11_spill] sm:$0xff] %v1701_v16 }
 0x111   :  { %v780_v29 = vadd.f32 %v779_v27, %v717_v25  ;;  %v647_v32 = vadd.f32 %v646_v24, %v1670_v28  ;;  %v718_v33 = vmul.f32 %v1670_v28, %v1670_v28 }
 0x112   :  { %v1675_v34 = vpop.f32.mrf.mxu0 }
 0x113   :  { %v648_v38 = vadd.f32 %v1651_v7, %v647_v32  ;;  %v781_v47 = vadd.f32 %v780_v29, %v718_v33  ;;  %v723_v18 = vmul.f32 %v1675_v34, %v1675_v34 }
 0x114   :  { %v1682_v48 = vpop.f32.mrf.mxu0 }
 0x115   :  { %v782_v53 = vadd.f32 %v781_v47, %v719_v37  ;;  %v649_v55 = vadd.f32 %v1663_v20, %v648_v38  ;;  %v721_v0 = vmul.f32 %v1682_v48, %v1682_v48  ;;  %v1713_v37 = vpop.f32.mrf.mxu1 }
 0x116   :  { %v1687_v56 = vpop.f32.mrf.mxu0  ;;  %2960 = vst [vmem:[#allocation12_spill] sm:$0xff] %v1713_v37 }
 0x117   :  { %v650_v62 = vadd.f32 %v649_v55, %v1682_v48  ;;  %v783_v2 = vadd.f32 %v782_v53, %v720_v51  ;;  %v724_v27 = vmul.f32 %v1687_v56, %v1687_v56 }
 0x118   :  { %v1694_v5 = vpop.f32.mrf.mxu0 }
 0x119   :  { %v784_v6 = vadd.f32 %v783_v2, %v721_v0  ;;  %v651_v10 = vadd.f32 %v650_v62, %v1694_v5  ;;  %v722_v11 = vmul.f32 %v1694_v5, %v1694_v5  ;;  %v1723_v2 = vpop.f32.mrf.mxu1 }
 0x11a   :  { %v1699_v14 = vpop.f32.mrf.mxu0 }
 0x11b   :  { %v652_v19 = vadd.f32 %v1675_v34, %v651_v10  ;;  %v785_v24 = vadd.f32 %v784_v6, %v722_v11  ;;  %v727_v6 = vmul.f32 %v1699_v14, %v1699_v14 }
 0x11c   :  { %v1706_v25 = vpop.f32.mrf.mxu0 }
 0x11d   :  { %v786_v29 = vadd.f32 %v785_v24, %v723_v18  ;;  %v653_v32 = vadd.f32 %v1687_v56, %v652_v19  ;;  %v725_v47 = vmul.f32 %v1706_v25, %v1706_v25 }
 0x11e   :  { %v1711_v33 = vpop.f32.mrf.mxu0 }
 0x11f   :  { %v654_v38 = vadd.f32 %v653_v32, %v1706_v25  ;;  %v787_v51 = vadd.f32 %v786_v29, %v724_v27  ;;  %v728_v18 = vmul.f32 %v1711_v33, %v1711_v33  ;;  %v1731_v27 = vpop.f32.mrf.mxu1  ;;  %v729_v29 = vmul.f32 %v1545_v44, %v1545_v44 }
 0x120   :  { %v1718_v53 = vpop.f32.mrf.mxu0  ;;  %2961 = vst [vmem:[#allocation13_spill] sm:$0xff] %v1731_v27 }
 0x121   :  { %v788_v55 = vadd.f32 %v787_v51, %v725_v47  ;;  %v655_v62 = vadd.f32 %v654_v38, %v1718_v53  ;;  %v726_v0 = vmul.f32 %v1718_v53, %v1718_v53  ;;  %v730_v51 = vmul.f32 %v1569_v59, %v1569_v59 }
 0x123   :  { %v656_v10 = vadd.f32 %v1699_v14, %v655_v62  ;;  %v789_v11 = vadd.f32 %v788_v55, %v726_v0  ;;  %v1739_v62 = vpop.f32.mrf.mxu1  ;;  %v731_v0 = vmul.f32 %v1539_v41, %v1539_v41 }
 0x124   :  { %2962 = vst [vmem:[#allocation14_spill] sm:$0xff] %v1739_v62 }
 0x125   :  { %v657_v19 = vadd.f32 %v1711_v33, %v656_v10  ;;  %v790_v24 = vadd.f32 %v789_v11, %v727_v6  ;;  %v732_v11 = vmul.f32 %v1557_v50, %v1557_v50 }
 0x127   :  { %v791_v32 = vadd.f32 %v790_v24, %v728_v18  ;;  %v658_v38 = vadd.f32 %v657_v19, %v1545_v44  ;;  %v1747_v24 = vpop.f32.mrf.mxu1 }
 0x128   :  { %2963 = vst [vmem:[#allocation15_spill] sm:$0xff] %v1747_v24 }
 0x129   :  { %v659_v47 = vadd.f32 %v658_v38, %v1569_v59  ;;  %v792_v55 = vadd.f32 %v791_v32, %v729_v29  ;;  %v733_v29 = vmul.f32 %v1593_v13, %v1593_v13 }
 0x12b   :  { %v660_v6 = vadd.f32 %v1539_v41, %v659_v47  ;;  %v793_v10 = vadd.f32 %v792_v55, %v730_v51  ;;  %v734_v47 = vmul.f32 %v1617_v31, %v1617_v31  ;;  %v1755_v51 = vpop.f32.mrf.mxu1  ;;  %v735_v55 = vmul.f32 %v1581_v4, %v1581_v4 }
 0x12c   :  { %2964 = vst [vmem:[#allocation16_spill] sm:$0xff] %v1755_v51 }
 0x12d   :  { %v794_v18 = vadd.f32 %v793_v10, %v731_v0  ;;  %v661_v19 = vadd.f32 %v1557_v50, %v660_v6  ;;  %v736_v10 = vmul.f32 %v1605_v22, %v1605_v22 }
 0x12f   :  { %v662_v38 = vadd.f32 %v661_v19, %v1593_v13  ;;  %v795_v32 = vadd.f32 %v794_v18, %v732_v11  ;;  %v1763_v18 = vpop.f32.mrf.mxu1 }
 0x130   :  { %2965 = vst [vmem:[#allocation17_spill] sm:$0xff] %v1763_v18 }
 0x131   :  { %v796_v59 = vadd.f32 %v795_v32, %v733_v29  ;;  %v663_v44 = vadd.f32 %v662_v38, %v1617_v31  ;;  %v737_v29 = vmul.f32 %v1641_v60, %v1641_v60 }
 0x133   :  { %v664_v0 = vadd.f32 %v1581_v4, %v663_v44  ;;  %v797_v6 = vadd.f32 %v796_v59, %v734_v47  ;;  %v738_v44 = vmul.f32 %v1665_v23, %v1665_v23  ;;  %v1771_v59 = vpop.f32.mrf.mxu1  ;;  %v739_v47 = vmul.f32 %v1629_v46, %v1629_v46 }
 0x134   :  { %2966 = vst [vmem:[#allocation18_spill] sm:$0xff] %v1771_v59 }
 0x135   :  { %v798_v19 = vadd.f32 %v797_v6, %v735_v55  ;;  %v665_v11 = vadd.f32 %v1605_v22, %v664_v0  ;;  %v740_v6 = vmul.f32 %v1653_v9, %v1653_v9 }
 0x137   :  { %v666_v38 = vadd.f32 %v665_v11, %v1641_v60  ;;  %v799_v32 = vadd.f32 %v798_v19, %v736_v10  ;;  %v1779_v19 = vpop.f32.mrf.mxu1 }
 0x138   :  { %2967 = vst [vmem:[#allocation19_spill] sm:$0xff] %v1779_v19 }
 0x139   :  { %v800_v31 = vadd.f32 %v799_v32, %v737_v29  ;;  %v667_v13 = vadd.f32 %v666_v38, %v1665_v23  ;;  %v741_v29 = vmul.f32 %v1689_v61, %v1689_v61 }
 0x13b   :  { %v668_v55 = vadd.f32 %v1629_v46, %v667_v13  ;;  %v801_v0 = vadd.f32 %v800_v31, %v738_v44  ;;  %v742_v13 = vmul.f32 %v1713_v37, %v1713_v37  ;;  %v1787_v31 = vpop.f32.mrf.mxu1  ;;  %v743_v44 = vmul.f32 %v1677_v36, %v1677_v36 }
 0x13c   :  { %2968 = vst [vmem:[#allocation20_spill] sm:$0xff] %v1787_v31 }
 0x13d   :  { %v802_v11 = vadd.f32 %v801_v0, %v739_v47  ;;  %v669_v10 = vadd.f32 %v1653_v9, %v668_v55  ;;  %v744_v0 = vmul.f32 %v1701_v16, %v1701_v16 }
 0x13f   :  { %v670_v38 = vadd.f32 %v669_v10, %v1689_v61  ;;  %v803_v32 = vadd.f32 %v802_v11, %v740_v6  ;;  %v1795_v11 = vpop.f32.mrf.mxu1 }
 0x140   :  { %2969 = vst [vmem:[#allocation21_spill] sm:$0xff] %v1795_v11 }
 0x141   :  { %v804_v23 = vadd.f32 %v803_v32, %v741_v29  ;;  %v671_v60 = vadd.f32 %v670_v38, %v1713_v37  ;;  %v745_v29 = vmul.f32 %v1731_v27, %v1731_v27 }
 0x143   :  { %v672_v47 = vadd.f32 %v1677_v36, %v671_v60  ;;  %v805_v55 = vadd.f32 %v804_v23, %v742_v13  ;;  %v746_v60 = vmul.f32 %v1747_v24, %v1747_v24  ;;  %v1803_v23 = vpop.f32.mrf.mxu1  ;;  %v747_v13 = vmul.f32 %v1723_v2, %v1723_v2 }
 0x144   :  { %2970 = vst [vmem:[#allocation22_spill] sm:$0xff] %v1803_v23 }
 0x145   :  { %v806_v10 = vadd.f32 %v805_v55, %v743_v44  ;;  %v673_v6 = vadd.f32 %v1701_v16, %v672_v47  ;;  %v748_v55 = vmul.f32 %v1739_v62, %v1739_v62 }
 0x147   :  { %v674_v38 = vadd.f32 %v673_v6, %v1731_v27  ;;  %v807_v32 = vadd.f32 %v806_v10, %v744_v0  ;;  %v1811_v10 = vpop.f32.mrf.mxu1 }
 0x148   :  { %2971 = vst [vmem:[#allocation23_spill] sm:$0xff] %v1811_v10 }
 0x149   :  { %v808_v37 = vadd.f32 %v807_v32, %v745_v29  ;;  %v675_v61 = vadd.f32 %v674_v38, %v1747_v24  ;;  %v749_v29 = vmul.f32 %v1763_v18, %v1763_v18 }
 0x14b   :  { %v676_v44 = vadd.f32 %v1723_v2, %v675_v61  ;;  %v809_v47 = vadd.f32 %v808_v37, %v746_v60  ;;  %v750_v61 = vmul.f32 %v1779_v19, %v1779_v19  ;;  %v1819_v37 = vpop.f32.mrf.mxu1  ;;  %v751_v60 = vmul.f32 %v1755_v51, %v1755_v51  ;;  %v2992_v9 = vld [vmem:[#allocation22_spill] sm:$0xff] }
 0x14d   :  { %v810_v6 = vadd.f32 %v809_v47, %v747_v13  ;;  %v677_v0 = vadd.f32 %v1739_v62, %v676_v44  ;;  %v752_v47 = vmul.f32 %v1771_v59, %v1771_v59 }
 0x14f   :  { %v678_v38 = vadd.f32 %v677_v0, %v1763_v18  ;;  %v811_v32 = vadd.f32 %v810_v6, %v748_v55  ;;  %v1827_v6 = vpop.f32.mrf.mxu1 }
 0x150   :  { %2972 = vst [vmem:[#allocation24_spill] sm:$0xff] %v1827_v6 }
 0x151   :  { %v812_v24 = vadd.f32 %v811_v32, %v749_v29  ;;  %v679_v27 = vadd.f32 %v678_v38, %v1779_v19  ;;  %v753_v29 = vmul.f32 %v1795_v11, %v1795_v11 }
 0x153   :  { %v680_v13 = vadd.f32 %v1755_v51, %v679_v27  ;;  %v813_v44 = vadd.f32 %v812_v24, %v750_v61  ;;  %v754_v27 = vmul.f32 %v1811_v10, %v1811_v10  ;;  %v1835_v24 = vpop.f32.mrf.mxu1  ;;  %v755_v61 = vmul.f32 %v1787_v31, %v1787_v31 }
 0x155   :  { %v814_v0 = vadd.f32 %v813_v44, %v751_v60  ;;  %v681_v55 = vadd.f32 %v1771_v59, %v680_v13  ;;  %v756_v44 = vmul.f32 %v1803_v23, %v1803_v23 }
 0x157   :  { %v682_v38 = vadd.f32 %v681_v55, %v1795_v11  ;;  %v815_v32 = vadd.f32 %v814_v0, %v752_v47  ;;  %v1843_v0 = vpop.f32.mrf.mxu1  ;;  %v2994_v16 = vld [vmem:[#allocation24_spill] sm:$0xff] }
 0x158   :  { %2973 = vst [vmem:[#allocation25_spill] sm:$0xff] %v1843_v0 }
 0x159   :  { %v816_v19 = vadd.f32 %v815_v32, %v753_v29  ;;  %v683_v18 = vadd.f32 %v682_v38, %v1811_v10  ;;  %v757_v29 = vmul.f32 %v1827_v6, %v1827_v6 }
 0x15b   :  { %v684_v60 = vadd.f32 %v1787_v31, %v683_v18  ;;  %v817_v13 = vadd.f32 %v816_v19, %v754_v27  ;;  %v758_v18 = vmul.f32 %v1843_v0, %v1843_v0  ;;  %v759_v19 = vmul.f32 %v1819_v37, %v1819_v37 }
 0x15d   :  { %v818_v55 = vadd.f32 %v817_v13, %v755_v61  ;;  %v685_v47 = vadd.f32 %v1803_v23, %v684_v60  ;;  %v760_v60 = vmul.f32 %v1835_v24, %v1835_v24 }
 0x15f   :  { %v686_v38 = vadd.f32 %v685_v47, %v1827_v6  ;;  %v819_v32 = vadd.f32 %v818_v55, %v756_v44 }
 0x161   :  { %v820_v10 = vadd.f32 %v819_v32, %v757_v29  ;;  %v687_v11 = vadd.f32 %v686_v38, %v1843_v0 }
 0x163   :  { %v688_v27 = vadd.f32 %v1819_v37, %v687_v11  ;;  %v821_v61 = vadd.f32 %v820_v10, %v758_v18 }
 0x165   :  { %v689_v13 = vadd.f32 %v1835_v24, %v688_v27  ;;  %v822_v47 = vadd.f32 %v821_v61, %v759_v19  ;;  %v902_v19 = vlaneseq }
 0x167   :  { %v690_v6 = vrot.slane %v689_v13, 4  ;;  %v823_v44 = vadd.f32 %v822_v47, %v760_v60 }
 0x169   :  { %v691_v55 = vadd.f32 %v690_v6, %v689_v13  ;;  %v824_v29 = vrot.slane %v823_v44, 4  ;;  %v1861_v6 = vshrl.u32 %v902_v19, 7  ;;  %v2979_v19 = vld [vmem:[#allocation8_spill] sm:$0xff] }
 0x16b   :  { %v692_v38 = vrot.slane %v691_v55, 2  ;;  %v825_v32 = vadd.f32 %v824_v29, %v823_v44  ;;  %v2983_v29 = vld [vmem:[#allocation15_spill] sm:$0xff]  ;;  %v2993_v36 = vsub.s32 0, %v1861_v6 }
 0x16d   :  { %v693_v23 = vadd.f32 %v692_v38, %v691_v55  ;;  %v826_v0 = vrot.slane %v825_v32, 2 }
 0x16f   :  { %v694_v31 = vrot.slane %v693_v23, 1  ;;  %v827_v59 = vadd.f32 %v826_v0, %v825_v32  ;;  %v2995_v0 = vld [vmem:[#allocation25_spill] sm:$0xff] }
 0x171   :  { %v695_v51 = vadd.f32 %v694_v31, %v693_v23  ;;  %v828_v62 = vrot.slane %v827_v59, 1 }
 0x173   :  { %v1857_v11 = vmul.f32 0.001953125, %v695_v51  ;;  %v829_v10 = vadd.f32 %v828_v62, %v827_v59  ;;  %v2990_v59 = vld [vmem:[#allocation23_spill] sm:$0xff]  ;;  %v2991_v62 = vld [vmem:[#allocation20_spill] sm:$0xff] }
 0x175   :  { %v830_v18 = vmul.f32 0.001953125, %v829_v10  ;;  %v831_v27 = vmul.f32 %v1857_v11, %v1857_v11  ;;  %v2974_v10 = vld [vmem:[#allocation2_spill] sm:$0xff]  ;;  %v2996_v23 = vsub.f32 %v1541_v42, %v1857_v11  ;;  %v2999_v51 = vsub.f32 %v1543_v43, %v1857_v11 }
 0x177   :  { %v832_v61 = vsub.f32 %v830_v18, %v831_v27  ;;  %v2975_v18 = vld [vmem:[#allocation3_spill] sm:$0xff]  ;;  %v2978_v27 = vld [vmem:[#allocation6_spill] sm:$0xff] }
 0x179   :  { %v833_v60 = vmax.f32 %v832_v61, 0.0  ;;  %v2976_v61 = vld [vmem:[#allocation4_spill] sm:$0xff] }
 0x17b   :  { %v834_v13 = vadd.f32 1e-05, %v833_v60  ;;  %v2977_v60 = vld [vmem:[#allocation5_spill] sm:$0xff] }
 0x17d   :  { %1390 = vrsqrt.f32 %v834_v13  ;;  %v836_v13 = vld [vmem:[%s2902_s2] sm:$0x1] }
 0x18a   :  { %v1391_v31 = vpop.eup %1390 }
 0x18b   :  { %v837_v55 = vmul.f32 %v1391_v31, %v836_v13  ;;  %v2989_v31 = vld [vmem:[#allocation21_spill] sm:$0xff] }
 0x18d   :  { %v1989_v38 = vrot.slane %v837_v55, %v2993_v36  ;;  %v2997_v36 = vsub.f32 %v1547_v45, %v1857_v11  ;;  %v2998_v55 = vsub.f32 %v1537_v40, %v1857_v11 }
 0x18f   :  { %v2003_v32 = vmul.f32 %v1989_v38, %v2996_v23  ;;  %v2009_v6 = vmul.f32 %v1989_v38, %v2997_v36  ;;  %v2015_v13 = vmul.f32 %v1989_v38, %v2998_v55  ;;  %v2021_v42 = vmul.f32 %v1989_v38, %v2999_v51 }
 0x190   :  { %v3000_v23 = vsub.f32 %v1562_v54, %v1857_v11  ;;  %v3001_v36 = vsub.f32 %v1574_v63, %v1857_v11  ;;  %v3002_v55 = vsub.f32 %v1555_v49, %v1857_v11  ;;  %v3003_v51 = vsub.f32 %v1567_v58, %v1857_v11 }
 0x192   :  { %v2027_v45 = vmul.f32 %v1989_v38, %v3000_v23  ;;  %v2033_v40 = vmul.f32 %v1989_v38, %v3001_v36  ;;  %v2039_v43 = vmul.f32 %v1989_v38, %v3002_v55  ;;  %v2045_v54 = vmul.f32 %v1989_v38, %v3003_v51 }
 0x193   :  { %v3004_v23 = vsub.f32 %v1586_v8, %v1857_v11  ;;  %v3005_v36 = vsub.f32 %v1598_v17, %v1857_v11  ;;  %v3006_v55 = vsub.f32 %v1579_v3, %v1857_v11  ;;  %v3007_v51 = vsub.f32 %v1591_v12, %v1857_v11 }
 0x195   :  { %v2051_v63 = vmul.f32 %v1989_v38, %v3004_v23  ;;  %v2057_v49 = vmul.f32 %v1989_v38, %v3005_v36  ;;  %v2063_v58 = vmul.f32 %v1989_v38, %v3006_v55  ;;  %v2069_v8 = vmul.f32 %v1989_v38, %v3007_v51 }
 0x196   :  { %v3008_v23 = vsub.f32 %v1610_v26, %v1857_v11  ;;  %v3009_v36 = vsub.f32 %v1622_v35, %v1857_v11  ;;  %v3010_v55 = vsub.f32 %v1603_v21, %v1857_v11  ;;  %v3011_v51 = vsub.f32 %v1615_v30, %v1857_v11 }
 0x198   :  { %v2075_v17 = vmul.f32 %v1989_v38, %v3008_v23  ;;  %v2081_v3 = vmul.f32 %v1989_v38, %v3009_v36  ;;  %v2087_v12 = vmul.f32 %v1989_v38, %v3010_v55  ;;  %v2093_v26 = vmul.f32 %v1989_v38, %v3011_v51 }
 0x199   :  { %v3012_v23 = vsub.f32 %v1634_v52, %v1857_v11  ;;  %v3013_v36 = vsub.f32 %v1646_v1, %v1857_v11  ;;  %v3014_v55 = vsub.f32 %v1627_v39, %v1857_v11  ;;  %v3015_v51 = vsub.f32 %v1639_v57, %v1857_v11 }
 0x19b   :  { %v2099_v35 = vmul.f32 %v1989_v38, %v3012_v23  ;;  %v2105_v21 = vmul.f32 %v1989_v38, %v3013_v36  ;;  %v2111_v30 = vmul.f32 %v1989_v38, %v3014_v55  ;;  %v2117_v52 = vmul.f32 %v1989_v38, %v3015_v51 }
 0x19c   :  { %v3016_v23 = vsub.f32 %v1658_v15, %v1857_v11  ;;  %v3017_v36 = vsub.f32 %v1670_v28, %v1857_v11  ;;  %v3018_v55 = vsub.f32 %v1651_v7, %v1857_v11  ;;  %v3019_v51 = vsub.f32 %v1663_v20, %v1857_v11 }
 0x19e   :  { %v2123_v1 = vmul.f32 %v1989_v38, %v3016_v23  ;;  %v2129_v39 = vmul.f32 %v1989_v38, %v3017_v36  ;;  %v2135_v57 = vmul.f32 %v1989_v38, %v3018_v55  ;;  %v2141_v15 = vmul.f32 %v1989_v38, %v3019_v51 }
 0x19f   :  { %v3020_v23 = vsub.f32 %v1682_v48, %v1857_v11  ;;  %v3021_v36 = vsub.f32 %v1694_v5, %v1857_v11  ;;  %v3022_v55 = vsub.f32 %v1675_v34, %v1857_v11  ;;  %v3023_v51 = vsub.f32 %v1687_v56, %v1857_v11 }
 0x1a1   :  { %v2147_v28 = vmul.f32 %v1989_v38, %v3020_v23  ;;  %v2153_v7 = vmul.f32 %v1989_v38, %v3021_v36  ;;  %v2159_v20 = vmul.f32 %v1989_v38, %v3022_v55  ;;  %v2165_v48 = vmul.f32 %v1989_v38, %v3023_v51 }
 0x1a2   :  { %v3024_v23 = vsub.f32 %v1706_v25, %v1857_v11  ;;  %v3025_v36 = vsub.f32 %v1718_v53, %v1857_v11  ;;  %v3026_v55 = vsub.f32 %v1699_v14, %v1857_v11  ;;  %v3027_v51 = vsub.f32 %v1711_v33, %v1857_v11 }
 0x1a4   :  { %v2171_v5 = vmul.f32 %v1989_v38, %v3024_v23  ;;  %v2177_v34 = vmul.f32 %v1989_v38, %v3025_v36  ;;  %v2183_v56 = vmul.f32 %v1989_v38, %v3026_v55  ;;  %v2189_v25 = vmul.f32 %v1989_v38, %v3027_v51 }
 0x1a5   :  { %v3028_v23 = vsub.f32 %v2974_v10, %v1857_v11  ;;  %v3029_v36 = vsub.f32 %v2975_v18, %v1857_v11  ;;  %v3030_v55 = vsub.f32 %v1539_v41, %v1857_v11  ;;  %v3031_v51 = vsub.f32 %v1557_v50, %v1857_v11 }
 0x1a7   :  { %v2195_v53 = vmul.f32 %v1989_v38, %v3028_v23  ;;  %v2201_v14 = vmul.f32 %v1989_v38, %v3029_v36  ;;  %v2207_v33 = vmul.f32 %v1989_v38, %v3030_v55  ;;  %v2213_v10 = vmul.f32 %v1989_v38, %v3031_v51 }
 0x1a8   :  { %v3032_v23 = vsub.f32 %v2976_v61, %v1857_v11  ;;  %v3033_v36 = vsub.f32 %v2977_v60, %v1857_v11  ;;  %v3034_v55 = vsub.f32 %v1581_v4, %v1857_v11  ;;  %v3035_v51 = vsub.f32 %v1605_v22, %v1857_v11 }
 0x1aa   :  { %v2219_v18 = vmul.f32 %v1989_v38, %v3032_v23  ;;  %v2225_v41 = vmul.f32 %v1989_v38, %v3033_v36  ;;  %v2231_v50 = vmul.f32 %v1989_v38, %v3034_v55  ;;  %v2237_v61 = vmul.f32 %v1989_v38, %v3035_v51  ;;  %v3041_v51 = vld [vmem:[#allocation7_spill] sm:$0xff] }
 0x1ab   :  { %v3036_v23 = vsub.f32 %v2978_v27, %v1857_v11  ;;  %v3037_v36 = vsub.f32 %v2979_v19, %v1857_v11  ;;  %v3039_v55 = vsub.f32 %v1629_v46, %v1857_v11  ;;  %v3042_v47 = vsub.f32 %v3041_v51, %v1857_v11 }
 0x1ad   :  { %v2243_v60 = vmul.f32 %v1989_v38, %v3036_v23  ;;  %v2249_v4 = vmul.f32 %v1989_v38, %v3037_v36  ;;  %v2255_v22 = vmul.f32 %v1989_v38, %v3039_v55  ;;  %v2261_v27 = vmul.f32 %v1989_v38, %v3042_v47  ;;  %v3044_v23 = vld [vmem:[#allocation10_spill] sm:$0xff]  ;;  %v3047_v36 = vld [vmem:[#allocation12_spill] sm:$0xff]  ;;  %v3049_v55 = vld [vmem:[#allocation9_spill] sm:$0xff] }
 0x1ae   :  { %v3045_v44 = vsub.f32 %v3044_v23, %v1857_v11  ;;  %v3051_v47 = vld [vmem:[#allocation11_spill] sm:$0xff] }
 0x1af   :  { %3038 = vst [vmem:[#allocation2_spill] sm:$0xff] %v2249_v4  ;;  %3040 = vst [vmem:[#allocation3_spill] sm:$0xff] %v2255_v22  ;;  %v3048_v4 = vsub.f32 %v3047_v36, %v1857_v11  ;;  %v3050_v22 = vsub.f32 %v3049_v55, %v1857_v11 }
 0x1b0   :  { %3043 = vst [vmem:[#allocation4_spill] sm:$0xff] %v2261_v27  ;;  %v2267_v19 = vmul.f32 %v1989_v38, %v3045_v44  ;;  %v3052_v27 = vsub.f32 %v3051_v47, %v1857_v11  ;;  %v3054_v44 = vld [vmem:[#allocation13_spill] sm:$0xff] }
 0x1b1   :  { %v2273_v46 = vmul.f32 %v1989_v38, %v3048_v4  ;;  %v2279_v51 = vmul.f32 %v1989_v38, %v3050_v22  ;;  %v3057_v4 = vsub.f32 %v2983_v29, %v1857_v11  ;;  %v3059_v22 = vsub.f32 %v1723_v2, %v1857_v11 }
 0x1b2   :  { %3046 = vst [vmem:[#allocation5_spill] sm:$0xff] %v2267_v19  ;;  %v2285_v23 = vmul.f32 %v1989_v38, %v3052_v27  ;;  %v3055_v19 = vsub.f32 %v3054_v44, %v1857_v11  ;;  %v3061_v27 = vld [vmem:[#allocation14_spill] sm:$0xff] }
 0x1b3   :  { %v2297_v55 = vmul.f32 %v1989_v38, %v3057_v4  ;;  %v2303_v47 = vmul.f32 %v1989_v38, %v3059_v22  ;;  %v3066_v4 = vld [vmem:[#allocation19_spill] sm:$0xff]  ;;  %v3068_v22 = vld [vmem:[#allocation16_spill] sm:$0xff] }
 0x1b4   :  { %3053 = vst [vmem:[#allocation6_spill] sm:$0xff] %v2285_v23  ;;  %v2291_v36 = vmul.f32 %v1989_v38, %v3055_v19  ;;  %v3062_v23 = vsub.f32 %v3061_v27, %v1857_v11  ;;  %v3064_v19 = vld [vmem:[#allocation17_spill] sm:$0xff] }
 0x1b5   :  { %3058 = vst [vmem:[#allocation15_spill] sm:$0xff] %v2297_v55  ;;  %3060 = vst [vmem:[#allocation21_spill] sm:$0xff] %v2303_v47  ;;  %v3067_v55 = vsub.f32 %v3066_v4, %v1857_v11  ;;  %v3069_v47 = vsub.f32 %v3068_v22, %v1857_v11 }
 0x1b6   :  { %3056 = vst [vmem:[#allocation8_spill] sm:$0xff] %v2291_v36  ;;  %v2309_v44 = vmul.f32 %v1989_v38, %v3062_v23  ;;  %v3065_v36 = vsub.f32 %v3064_v19, %v1857_v11  ;;  %v3070_v23 = vld [vmem:[#allocation18_spill] sm:$0xff] }
 0x1b7   :  { %v2321_v2 = vmul.f32 %v1989_v38, %v3067_v55  ;;  %v2327_v27 = vmul.f32 %v1989_v38, %v3069_v47  ;;  %v3073_v55 = vsub.f32 %v2989_v31, %v1857_v11  ;;  %v3074_v47 = vsub.f32 %v2990_v59, %v1857_v11 }
 0x1b8   :  { %3063 = vst [vmem:[#allocation23_spill] sm:$0xff] %v2309_v44  ;;  %v2315_v29 = vmul.f32 %v1989_v38, %v3065_v36  ;;  %v3071_v44 = vsub.f32 %v3070_v23, %v1857_v11  ;;  %v2338_v36 = vld [vmem:[%s2903_s3] ss:$0 sm:$0xff] }
 0x1b9   :  { %v2344_v4 = vmul.f32 %v1989_v38, %v3073_v55  ;;  %v2350_v22 = vmul.f32 %v1989_v38, %v3074_v47  ;;  %v3077_v55 = vsub.f32 %v2994_v16, %v1857_v11  ;;  %v3078_v47 = vsub.f32 %v2995_v0, %v1857_v11 }
 0x1ba   :  { %v2333_v19 = vmul.f32 %v1989_v38, %v3071_v44  ;;  %v3075_v44 = vsub.f32 %v2991_v62, %v1857_v11  ;;  %v2394_v0 = vadd.f32 %v2338_v36, %v2009_v6  ;;  %v2426_v6 = vadd.f32 %v2338_v36, %v2057_v49 }
 0x1bb   :  { %v2368_v59 = vmul.f32 %v1989_v38, %v3077_v55  ;;  %v2374_v62 = vmul.f32 %v1989_v38, %v3078_v47  ;;  %v2390_v55 = vadd.f32 %v2338_v36, %v2003_v32  ;;  %v2402_v47 = vadd.f32 %v2338_v36, %v2021_v42 }
 0x1bc   :  { %3072 = vst [vmem:[#allocation20_spill] sm:$0xff] %v2333_v19  ;;  %v2356_v23 = vmul.f32 %v1989_v38, %v3075_v44  ;;  %v3076_v19 = vsub.f32 %v2992_v9, %v1857_v11  ;;  %v3079_v44 = vsub.f32 %v1819_v37, %v1857_v11  ;;  %v2398_v37 = vadd.f32 %v2338_v36, %v2015_v13 }
 0x1bd   :  { %v2418_v32 = vadd.f32 %v2338_v36, %v2045_v54  ;;  %v2422_v13 = vadd.f32 %v2338_v36, %v2051_v63  ;;  %v2430_v42 = vadd.f32 %v2338_v36, %v2063_v58  ;;  %v2446_v54 = vadd.f32 %v2338_v36, %v2087_v12 }
 0x1be   :  { %v2362_v31 = vmul.f32 %v1989_v38, %v3076_v19  ;;  %v2380_v9 = vmul.f32 %v1989_v38, %v3079_v44  ;;  %v3080_v19 = vsub.f32 %v1835_v24, %v1857_v11  ;;  %v2406_v24 = vadd.f32 %v2338_v36, %v2027_v45  ;;  %v3085_v44 = vld [vmem:[#allocation4_spill] sm:$0xff] }
 0x1bf   :  { %v2410_v11 = vadd.f32 %v2338_v36, %v2033_v40  ;;  %v2434_v45 = vadd.f32 %v2338_v36, %v2069_v8  ;;  %v2438_v40 = vadd.f32 %v2338_v36, %v2075_v17  ;;  %v2450_v63 = vadd.f32 %v2338_v36, %v2093_v26 }
 0x1c0   :  { %v2386_v16 = vmul.f32 %v1989_v38, %v3080_v19  ;;  %v2414_v38 = vadd.f32 %v2338_v36, %v2039_v43  ;;  %v2442_v43 = vadd.f32 %v2338_v36, %v2081_v3  ;;  %v2454_v49 = vadd.f32 %v2338_v36, %v2099_v35  ;;  %v3087_v19 = vld [vmem:[#allocation5_spill] sm:$0xff] }
 0x1c1   :  { %v2458_v58 = vadd.f32 %v2338_v36, %v2105_v21  ;;  %v2462_v8 = vadd.f32 %v2338_v36, %v2111_v30  ;;  %v2466_v17 = vadd.f32 %v2338_v36, %v2117_v52  ;;  %v2470_v3 = vadd.f32 %v2338_v36, %v2123_v1 }
 0x1c2   :  { %v2474_v12 = vadd.f32 %v2338_v36, %v2129_v39  ;;  %v2478_v26 = vadd.f32 %v2338_v36, %v2135_v57  ;;  %v2482_v35 = vadd.f32 %v2338_v36, %v2141_v15  ;;  %v2486_v21 = vadd.f32 %v2338_v36, %v2147_v28 }
 0x1c3   :  { %v2490_v30 = vadd.f32 %v2338_v36, %v2153_v7  ;;  %v2494_v52 = vadd.f32 %v2338_v36, %v2159_v20  ;;  %v2498_v1 = vadd.f32 %v2338_v36, %v2165_v48  ;;  %v2502_v39 = vadd.f32 %v2338_v36, %v2171_v5 }
 0x1c4   :  { %v2506_v57 = vadd.f32 %v2338_v36, %v2177_v34  ;;  %v2510_v15 = vadd.f32 %v2338_v36, %v2183_v56  ;;  %v2514_v28 = vadd.f32 %v2338_v36, %v2189_v25  ;;  %v2518_v7 = vadd.f32 %v2338_v36, %v2195_v53 }
 0x1c5   :  { %v2522_v20 = vadd.f32 %v2338_v36, %v2201_v14  ;;  %v2526_v48 = vadd.f32 %v2338_v36, %v2207_v33  ;;  %v2530_v5 = vadd.f32 %v2338_v36, %v2213_v10  ;;  %v2534_v34 = vadd.f32 %v2338_v36, %v2219_v18  ;;  %v3081_v33 = vld [vmem:[#allocation2_spill] sm:$0xff]  ;;  %v3083_v18 = vld [vmem:[#allocation3_spill] sm:$0xff] }
 0x1c6   :  { %v2538_v56 = vadd.f32 %v2338_v36, %v2225_v41  ;;  %v2542_v25 = vadd.f32 %v2338_v36, %v2231_v50  ;;  %v2546_v53 = vadd.f32 %v2338_v36, %v2237_v61  ;;  %v2550_v14 = vadd.f32 %v2338_v36, %v2243_v60 }
 0x1c7   :  { %v2554_v10 = vadd.f32 %v2338_v36, %v3081_v33  ;;  %v2558_v41 = vadd.f32 %v2338_v36, %v3083_v18  ;;  %v2562_v50 = vadd.f32 %v2338_v36, %v3085_v44  ;;  %v2566_v61 = vadd.f32 %v2338_v36, %v3087_v19 }
 0x1c8   :  { %v2570_v60 = vadd.f32 %v2338_v36, %v2273_v46  ;;  %v2574_v33 = vadd.f32 %v2338_v36, %v2279_v51 }
 0x1c9   :  { %3082 = vst [vmem:[#allocation22_spill] sm:$0xff] %v2554_v10  ;;  %3084 = vst [vmem:[#allocation24_spill] sm:$0xff] %v2558_v41  ;;  %v3090_v10 = vld [vmem:[#allocation6_spill] sm:$0xff]  ;;  %v3091_v41 = vld [vmem:[#allocation8_spill] sm:$0xff] }
 0x1ca   :  { %3086 = vst [vmem:[#allocation25_spill] sm:$0xff] %v2562_v50  ;;  %3088 = vst [vmem:[#allocation7_spill] sm:$0xff] %v2566_v61  ;;  %v2578_v18 = vadd.f32 %v2338_v36, %v3090_v10  ;;  %v2582_v44 = vadd.f32 %v2338_v36, %v3091_v41  ;;  %v3092_v50 = vld [vmem:[#allocation15_spill] sm:$0xff]  ;;  %v3094_v61 = vld [vmem:[#allocation21_spill] sm:$0xff]  ;;  %v2598_v10 = vadd.f32 %v2338_v36, %v2315_v29 }
 0x1cb   :  { %3089 = vst [vmem:[#allocation10_spill] sm:$0xff] %v2570_v60  ;;  %v2586_v19 = vadd.f32 %v2338_v36, %v3092_v50  ;;  %v2590_v46 = vadd.f32 %v2338_v36, %v3094_v61  ;;  %v3095_v60 = vld [vmem:[#allocation23_spill] sm:$0xff]  ;;  %v2602_v41 = vadd.f32 %v2338_v36, %v2321_v2  ;;  %v2606_v50 = vadd.f32 %v2338_v36, %v2327_v27 }
 0x1cc   :  { %v2594_v51 = vadd.f32 %v2338_v36, %v3095_v60  ;;  %v2614_v60 = vadd.f32 %v2338_v36, %v2344_v4  ;;  %v2618_v29 = vadd.f32 %v2338_v36, %v2350_v22  ;;  %v2622_v2 = vadd.f32 %v2338_v36, %v2356_v23 }
 0x1cd   :  { %3093 = vst [vmem:[#allocation12_spill] sm:$0xff] %v2586_v19  ;;  %v3096_v19 = vld [vmem:[#allocation20_spill] sm:$0xff]  ;;  %v2626_v27 = vadd.f32 %v2338_v36, %v2362_v31  ;;  %v2634_v4 = vadd.f32 %v2338_v36, %v2374_v62  ;;  %v2638_v22 = vadd.f32 %v2338_v36, %v2380_v9  ;;  %v2642_v23 = vadd.f32 %v2338_v36, %v2386_v16 }
 0x1ce   :  { %v2610_v61 = vadd.f32 %v2338_v36, %v3096_v19  ;;  %3097 = vst [vmem:[#allocation9_spill] sm:$0xff] %v2622_v2  ;;  %v2630_v19 = vadd.f32 %v2338_v36, %v2368_v59  ;;  %v1041_v2 = vmax.f32 %v2390_v55, 0.0  ;;  %v1042_v31 = vmax.f32 %v2394_v0, 0.0 }
 0x1cf   :  { %3098 = vst [vmem:[#allocation11_spill] sm:$0xff] %v2626_v27  ;;  %3100 = vst [vmem:[#allocation14_spill] sm:$0xff] %v2634_v4  ;;  %v1043_v27 = vmax.f32 %v2398_v37, 0.0  ;;  %v1044_v59 = vmax.f32 %v2402_v47, 0.0  ;;  %v1046_v62 = vmax.f32 %v2410_v11, 0.0  ;;  %v1047_v4 = vmax.f32 %v2414_v38, 0.0 }
 0x1d0   :  { %3099 = vst [vmem:[#allocation13_spill] sm:$0xff] %v2630_v19  ;;  %3101 = vst [vmem:[#allocation17_spill] sm:$0xff] %v2638_v22  ;;  %v1045_v19 = vmax.f32 %v2406_v24, 0.0  ;;  %v1048_v9 = vmax.f32 %v2418_v32, 0.0  ;;  %v1049_v22 = vmax.f32 %v2422_v13, 0.0  ;;  %v1050_v36 = vmax.f32 %v2426_v6, 0.0 }
 0x1d1   :  { %v1051_v16 = vmax.f32 %v2430_v42, 0.0  ;;  %v1052_v55 = vmax.f32 %v2434_v45, 0.0  ;;  %1105 = vst [vmem:[%s2904_s4] sm:$0xff] %v1041_v2  ;;  %1106 = vst [vmem:[%s2904_s4 + $0x8] sm:$0xff] %v1042_v31  ;;  %v1053_v0 = vmax.f32 %v2438_v40, 0.0  ;;  %v1054_v37 = vmax.f32 %v2442_v43, 0.0 }
 0x1d2   :  { %1107 = vst [vmem:[%s2904_s4 + $0x10] sm:$0xff] %v1043_v27  ;;  %1108 = vst [vmem:[%s2904_s4 + $0x18] sm:$0xff] %v1044_v59  ;;  %v1055_v47 = vmax.f32 %v2446_v54, 0.0  ;;  %v1056_v24 = vmax.f32 %v2450_v63, 0.0  ;;  %v1057_v11 = vmax.f32 %v2454_v49, 0.0  ;;  %v1058_v38 = vmax.f32 %v2458_v58, 0.0 }
 0x1d3   :  { %1109 = vst [vmem:[%s2904_s4 + $0x20] sm:$0xff] %v1045_v19  ;;  %1110 = vst [vmem:[%s2904_s4 + $0x28] sm:$0xff] %v1046_v62  ;;  %v1059_v32 = vmax.f32 %v2462_v8, 0.0  ;;  %v1060_v13 = vmax.f32 %v2466_v17, 0.0  ;;  %v1061_v6 = vmax.f32 %v2470_v3, 0.0  ;;  %v1062_v42 = vmax.f32 %v2474_v12, 0.0 }
 0x1d4   :  { %1111 = vst [vmem:[%s2904_s4 + $0x30] sm:$0xff] %v1047_v4  ;;  %1112 = vst [vmem:[%s2904_s4 + $0x38] sm:$0xff] %v1048_v9  ;;  %v1063_v45 = vmax.f32 %v2478_v26, 0.0  ;;  %v1064_v40 = vmax.f32 %v2482_v35, 0.0  ;;  %v1065_v43 = vmax.f32 %v2486_v21, 0.0  ;;  %v1066_v54 = vmax.f32 %v2490_v30, 0.0 }
 0x1d5   :  { %1113 = vst [vmem:[%s2904_s4 + $0x40] sm:$0xff] %v1049_v22  ;;  %1114 = vst [vmem:[%s2904_s4 + $0x48] sm:$0xff] %v1050_v36  ;;  %v1067_v63 = vmax.f32 %v2494_v52, 0.0  ;;  %v1068_v49 = vmax.f32 %v2498_v1, 0.0  ;;  %v1069_v58 = vmax.f32 %v2502_v39, 0.0  ;;  %v1070_v8 = vmax.f32 %v2506_v57, 0.0 }
 0x1d6   :  { %1115 = vst [vmem:[%s2904_s4 + $0x50] sm:$0xff] %v1051_v16  ;;  %1116 = vst [vmem:[%s2904_s4 + $0x58] sm:$0xff] %v1052_v55  ;;  %v1071_v17 = vmax.f32 %v2510_v15, 0.0  ;;  %v1072_v3 = vmax.f32 %v2514_v28, 0.0  ;;  %v1073_v12 = vmax.f32 %v2518_v7, 0.0  ;;  %v1074_v26 = vmax.f32 %v2522_v20, 0.0 }
 0x1d7   :  { %1117 = vst [vmem:[%s2904_s4 + $0x60] sm:$0xff] %v1053_v0  ;;  %1118 = vst [vmem:[%s2904_s4 + $0x68] sm:$0xff] %v1054_v37  ;;  %v1075_v35 = vmax.f32 %v2526_v48, 0.0  ;;  %v1076_v21 = vmax.f32 %v2530_v5, 0.0  ;;  %v1077_v30 = vmax.f32 %v2534_v34, 0.0  ;;  %v1078_v52 = vmax.f32 %v2538_v56, 0.0 }
 0x1d8   :  { %1119 = vst [vmem:[%s2904_s4 + $0x70] sm:$0xff] %v1055_v47  ;;  %1120 = vst [vmem:[%s2904_s4 + $0x78] sm:$0xff] %v1056_v24  ;;  %v1079_v1 = vmax.f32 %v2542_v25, 0.0  ;;  %v1080_v39 = vmax.f32 %v2546_v53, 0.0  ;;  %v1081_v57 = vmax.f32 %v2550_v14, 0.0  ;;  %v3102_v15 = vld [vmem:[#allocation22_spill] sm:$0xff] }
 0x1d9   :  { %1121 = vst [vmem:[%s2904_s4 + $0x80] sm:$0xff] %v1057_v11  ;;  %1122 = vst [vmem:[%s2904_s4 + $0x88] sm:$0xff] %v1058_v38  ;;  %v1082_v28 = vmax.f32 %v3102_v15, 0.0  ;;  %v3103_v7 = vld [vmem:[#allocation24_spill] sm:$0xff]  ;;  %v3104_v48 = vld [vmem:[#allocation25_spill] sm:$0xff]  ;;  %v1087_v14 = vmax.f32 %v2574_v33, 0.0 }
 0x1da   :  { %1123 = vst [vmem:[%s2904_s4 + $0x90] sm:$0xff] %v1059_v32  ;;  %1124 = vst [vmem:[%s2904_s4 + $0x98] sm:$0xff] %v1060_v13  ;;  %v1083_v20 = vmax.f32 %v3103_v7, 0.0  ;;  %v1084_v5 = vmax.f32 %v3104_v48, 0.0  ;;  %v3105_v34 = vld [vmem:[#allocation7_spill] sm:$0xff]  ;;  %v3106_v25 = vld [vmem:[#allocation10_spill] sm:$0xff] }
 0x1db   :  { %1125 = vst [vmem:[%s2904_s4 + $0xa0] sm:$0xff] %v1061_v6  ;;  %1126 = vst [vmem:[%s2904_s4 + $0xa8] sm:$0xff] %v1062_v42  ;;  %v1085_v56 = vmax.f32 %v3105_v34, 0.0  ;;  %v1086_v53 = vmax.f32 %v3106_v25, 0.0  ;;  %v1088_v2 = vmax.f32 %v2578_v18, 0.0  ;;  %v1089_v33 = vmax.f32 %v2582_v44, 0.0 }
 0x1dc   :  { %1127 = vst [vmem:[%s2904_s4 + $0xb0] sm:$0xff] %v1063_v45  ;;  %1128 = vst [vmem:[%s2904_s4 + $0xb8] sm:$0xff] %v1064_v40  ;;  %v3107_v27 = vld [vmem:[#allocation12_spill] sm:$0xff]  ;;  %v1091_v19 = vmax.f32 %v2590_v46, 0.0  ;;  %v1092_v4 = vmax.f32 %v2594_v51, 0.0  ;;  %v1093_v44 = vmax.f32 %v2598_v10, 0.0 }
 0x1dd   :  { %1129 = vst [vmem:[%s2904_s4 + $0xc0] sm:$0xff] %v1065_v43  ;;  %1130 = vst [vmem:[%s2904_s4 + $0xc8] sm:$0xff] %v1066_v54  ;;  %v1090_v18 = vmax.f32 %v3107_v27, 0.0  ;;  %v1094_v46 = vmax.f32 %v2602_v41, 0.0  ;;  %v1095_v51 = vmax.f32 %v2606_v50, 0.0  ;;  %v1096_v22 = vmax.f32 %v2610_v61, 0.0 }
 0x1de   :  { %1131 = vst [vmem:[%s2904_s4 + $0xd0] sm:$0xff] %v1067_v63  ;;  %1132 = vst [vmem:[%s2904_s4 + $0xd8] sm:$0xff] %v1068_v49  ;;  %v1097_v10 = vmax.f32 %v2614_v60, 0.0  ;;  %v1098_v41 = vmax.f32 %v2618_v29, 0.0  ;;  %v3108_v50 = vld [vmem:[#allocation9_spill] sm:$0xff]  ;;  %v3109_v31 = vld [vmem:[#allocation11_spill] sm:$0xff] }
 0x1df   :  { %1133 = vst [vmem:[%s2904_s4 + $0xe0] sm:$0xff] %v1069_v58  ;;  %1134 = vst [vmem:[%s2904_s4 + $0xe8] sm:$0xff] %v1070_v8  ;;  %v1099_v61 = vmax.f32 %v3108_v50, 0.0  ;;  %v1100_v59 = vmax.f32 %v3109_v31, 0.0  ;;  %v3110_v60 = vld [vmem:[#allocation13_spill] sm:$0xff]  ;;  %v3111_v62 = vld [vmem:[#allocation14_spill] sm:$0xff] }
 0x1e0   :  { %1135 = vst [vmem:[%s2904_s4 + $0xf0] sm:$0xff] %v1071_v17  ;;  %1136 = vst [vmem:[%s2904_s4 + $0xf8] sm:$0xff] %v1072_v3  ;;  %v1101_v29 = vmax.f32 %v3110_v60, 0.0  ;;  %v1102_v9 = vmax.f32 %v3111_v62, 0.0  ;;  %v3112_v36 = vld [vmem:[#allocation17_spill] sm:$0xff]  ;;  %v1104_v55 = vmax.f32 %v2642_v23, 0.0 }
 0x1e1   :  { %1137 = vst [vmem:[%s2904_s4 + $0x100] sm:$0xff] %v1073_v12  ;;  %1138 = vst [vmem:[%s2904_s4 + $0x108] sm:$0xff] %v1074_v26  ;;  %v1103_v16 = vmax.f32 %v3112_v36, 0.0 }
 0x1e2   :  { %1139 = vst [vmem:[%s2904_s4 + $0x110] sm:$0xff] %v1075_v35  ;;  %1140 = vst [vmem:[%s2904_s4 + $0x118] sm:$0xff] %v1076_v21 }
 0x1e3   :  { %1141 = vst [vmem:[%s2904_s4 + $0x120] sm:$0xff] %v1077_v30  ;;  %1142 = vst [vmem:[%s2904_s4 + $0x128] sm:$0xff] %v1078_v52 }
 0x1e4   :  { %1143 = vst [vmem:[%s2904_s4 + $0x130] sm:$0xff] %v1079_v1  ;;  %1144 = vst [vmem:[%s2904_s4 + $0x138] sm:$0xff] %v1080_v39 }
 0x1e5   :  { %1145 = vst [vmem:[%s2904_s4 + $0x140] sm:$0xff] %v1081_v57  ;;  %1146 = vst [vmem:[%s2904_s4 + $0x148] sm:$0xff] %v1082_v28 }
 0x1e6   :  { %1147 = vst [vmem:[%s2904_s4 + $0x150] sm:$0xff] %v1083_v20  ;;  %1148 = vst [vmem:[%s2904_s4 + $0x158] sm:$0xff] %v1084_v5 }
 0x1e7   :  { %1149 = vst [vmem:[%s2904_s4 + $0x160] sm:$0xff] %v1085_v56  ;;  %1150 = vst [vmem:[%s2904_s4 + $0x168] sm:$0xff] %v1086_v53 }
 0x1e8   :  { %1151 = vst [vmem:[%s2904_s4 + $0x170] sm:$0xff] %v1087_v14  ;;  %1152 = vst [vmem:[%s2904_s4 + $0x178] sm:$0xff] %v1088_v2 }
 0x1e9   :  { %1153 = vst [vmem:[%s2904_s4 + $0x180] sm:$0xff] %v1089_v33  ;;  %1154 = vst [vmem:[%s2904_s4 + $0x188] sm:$0xff] %v1090_v18 }
 0x1ea   :  { %1155 = vst [vmem:[%s2904_s4 + $0x190] sm:$0xff] %v1091_v19  ;;  %1156 = vst [vmem:[%s2904_s4 + $0x198] sm:$0xff] %v1092_v4 }
 0x1eb   :  { %1157 = vst [vmem:[%s2904_s4 + $0x1a0] sm:$0xff] %v1093_v44  ;;  %1158 = vst [vmem:[%s2904_s4 + $0x1a8] sm:$0xff] %v1094_v46 }
 0x1ec   :  { %1159 = vst [vmem:[%s2904_s4 + $0x1b0] sm:$0xff] %v1095_v51  ;;  %1160 = vst [vmem:[%s2904_s4 + $0x1b8] sm:$0xff] %v1096_v22 }
 0x1ed   :  { %1161 = vst [vmem:[%s2904_s4 + $0x1c0] sm:$0xff] %v1097_v10  ;;  %1162 = vst [vmem:[%s2904_s4 + $0x1c8] sm:$0xff] %v1098_v41 }
 0x1ee   :  { %1163 = vst [vmem:[%s2904_s4 + $0x1d0] sm:$0xff] %v1099_v61  ;;  %1164 = vst [vmem:[%s2904_s4 + $0x1d8] sm:$0xff] %v1100_v59 }
 0x1ef   :  { %1165 = vst [vmem:[%s2904_s4 + $0x1e0] sm:$0xff] %v1101_v29  ;;  %1166 = vst [vmem:[%s2904_s4 + $0x1e8] sm:$0xff] %v1102_v9 }
 0x1f0   :  { %1167 = vst [vmem:[%s2904_s4 + $0x1f0] sm:$0xff] %v1103_v16  ;;  %1168 = vst [vmem:[%s2904_s4 + $0x1f8] sm:$0xff] %v1104_v55 }

// kernel: classifier_forward.3
= control target key start
LH: loop header
LB: loop body
LE: loop exit
PB: predicated region body
PF: predicated region fallthrough
CT: control target
= control target key end

     0   :  { %vm512_vm0 = vcmask 261120   ;;  %vm804_vm1 = vcmask 0   ;;  %s1325_s1 = inlined_call_operand.vmem [shape: bf16[800,128], index: 1, kind: input, shape index: {}]   ;;  %s1326_s0 = inlined_call_operand.vmem [shape: bf16[32,800], index: 0, kind: input, shape index: {}]   ;;  %s1327_s2 = inlined_call_operand.vmem [shape: f32[1,128], index: 2, kind: input, shape index: {}]   ;;  %s1328_s3 = inlined_call_operand.vmem [shape: f32[1,128], index: 3, kind: input, shape index: {}]   ;;  %s1329_s4 = inlined_call_operand.vmem [shape: f32[32,128], index: 4, kind: input, shape index: {}]   ;;  %s1330_s5 = inlined_call_operand.<no memory space> [shape: f32[1,1], index: 5, kind: input, shape index: {}]   ;;  %s1331_s6 = inlined_call_operand.vmem [shape: f32[2,1], index: 6, kind: output, shape index: {}]  }
   0x1   :  { %v991_v0 = vld [vmem:[%s1325_s1 + $0x78] sm:$0xff]   ;;  %v995_v4 = vld [vmem:[%s1325_s1 + $0x70] sm:$0xff]   ;;  %v999_v8 = vld [vmem:[%s1325_s1 + $0x68] sm:$0xff]  }
   0x2   :  { %v992_v1 = vld [vmem:[%s1325_s1 + $0xf8] sm:$0xff]   ;;  %895 = vmatprep.subr.bf16.mxu0 %v991_v0  ;;  %v996_v5 = vld [vmem:[%s1325_s1 + $0xf0] sm:$0xff]   ;;  %v1000_v9 = vld [vmem:[%s1325_s1 + $0xe8] sm:$0xff]  }
   0x3   :  { %v993_v2 = vld [vmem:[%s1325_s1 + $0x38] sm:$0xff]   ;;  %923 = vmatprep.subr.bf16.mxu1 %v992_v1  ;;  %v997_v6 = vld [vmem:[%s1325_s1 + $0x30] sm:$0xff]   ;;  %v1001_v10 = vld [vmem:[%s1325_s1 + $0x28] sm:$0xff]  }
   0x4   :  { %v994_v3 = vld [vmem:[%s1325_s1 + $0xb8] sm:$0xff]   ;;  %896 = vmatpush3.bf16.msra.mxu0 %v993_v2  ;;  %v998_v7 = vld [vmem:[%s1325_s1 + $0xb0] sm:$0xff]   ;;  %v1002_v11 = vld [vmem:[%s1325_s1 + $0xa8] sm:$0xff]  }
   0x5   :  { %924 = vmatpush3.bf16.msra.mxu1 %v994_v3  ;;  %897 = vmatprep.subr.bf16.mxu0 %v995_v4  ;;  %v1003_v12 = vld [vmem:[%s1325_s1 + $0x60] sm:$0xff]   ;;  %v1007_v16 = vld [vmem:[%s1325_s1 + $0x58] sm:$0xff]   ;;  %v1011_v20 = vld [vmem:[%s1325_s1 + $0x50] sm:$0xff]  }
   0x6   :  { %925 = vmatprep.subr.bf16.mxu1 %v996_v5  ;;  %v1004_v13 = vld [vmem:[%s1325_s1 + $0xe0] sm:$0xff]   ;;  %v1008_v17 = vld [vmem:[%s1325_s1 + $0xd8] sm:$0xff]   ;;  %v1012_v21 = vld [vmem:[%s1325_s1 + $0xd0] sm:$0xff]  }
   0x7   :  { %v1005_v14 = vld [vmem:[%s1325_s1 + $0x20] sm:$0xff]   ;;  %v1009_v18 = vld [vmem:[%s1325_s1 + $0x18] sm:$0xff]   ;;  %v1013_v22 = vld [vmem:[%s1325_s1 + $0x10] sm:$0xff]  }
   0x8   :  { %898 = vmatpush3.bf16.msra.mxu0 %v997_v6  ;;  %v1006_v15 = vld [vmem:[%s1325_s1 + $0xa0] sm:$0xff]   ;;  %v1010_v19 = vld [vmem:[%s1325_s1 + $0x98] sm:$0xff]   ;;  %v1014_v23 = vld [vmem:[%s1325_s1 + $0x90] sm:$0xff]  }
   0x9   :  { %926 = vmatpush3.bf16.msra.mxu1 %v998_v7  ;;  %899 = vmatprep.subr.bf16.mxu0 %v999_v8  ;;  %v1015_v24 = vld [vmem:[%s1325_s1 + $0x48] sm:$0xff]   ;;  %v1019_v28 = vld [vmem:[%s1325_s1 + $0x40] sm:$0xff]   ;;  %v1029_v36 = vld [vmem:[%s1325_s1 + $0x178] sm:$0xff]  }
   0xa   :  { %927 = vmatprep.subr.bf16.mxu1 %v1000_v9  ;;  %v1016_v25 = vld [vmem:[%s1325_s1 + $0xc8] sm:$0xff]   ;;  %v1020_v29 = vld [vmem:[%s1325_s1 + $0xc0] sm:$0xff]   ;;  %v1030_v37 = vld [vmem:[%s1325_s1 + $0x138] sm:$0xff]  }
   0xb   :  { %v1017_v26 = vld [vmem:[%s1325_s1 + $0x8] sm:$0xff]   ;;  %v1021_v30 = vld [vmem:[%s1325_s1] sm:$0xff]   ;;  %v1031_v38 = vld [vmem:[%s1325_s1 + $0x170] sm:$0xff]  }
   0xc   :  { %900 = vmatpush3.bf16.msra.mxu0 %v1001_v10  ;;  %v1018_v27 = vld [vmem:[%s1325_s1 + $0x88] sm:$0xff]   ;;  %v1022_v31 = vld [vmem:[%s1325_s1 + $0x80] sm:$0xff]   ;;  %v1032_v39 = vld [vmem:[%s1325_s1 + $0x130] sm:$0xff]  }
   0xd   :  { %928 = vmatpush3.bf16.msra.mxu1 %v1002_v11  ;;  %901 = vmatprep.subr.bf16.mxu0 %v1003_v12  ;;  %v1023_v32 = vld [vmem:[%s1326_s0] ss:$28 sps:$4 sm:$0xff]   ;;  %v1026_v34 = vld [vmem:[%s1326_s0 + $0x8] ss:$28 sps:$4 sm:$0xff]   ;;  %v1043_v47 = vld [vmem:[%s1326_s0 + $0x38] ss:$28 sps:$4 sm:$0xff]  }
   0xe   :  { %929 = vmatprep.subr.bf16.mxu1 %v1004_v13  ;;  %v1025_v33 = vld [vmem:[%s1326_s0 + $0x4] ss:$28 sps:$4 sm:$0xff]   ;;  %v1028_v35 = vld [vmem:[%s1326_s0 + $0xc] ss:$28 sps:$4 sm:$0xff]   ;;  %v1038_v44 = vld [vmem:[%s1326_s0 + $0x3c] ss:$28 sps:$4 sm:$0xff]  }
   0xf   :  { %551 = vmatprep.mubr.bf16.mxu0 %v1025_v33  ;;  %600 = vmatprep.mubr.bf16.mxu1 %v1028_v35  ;;  %v1033_v40 = vld [vmem:[%s1325_s1 + $0x168] sm:$0xff]   ;;  %v1035_v42 = vld [vmem:[%s1325_s1 + $0x160] sm:$0xff]   ;;  %v1037_v46 = vld [vmem:[%s1325_s1 + $0x158] sm:$0xff]  }
  0x10   :  { %902 = vmatpush3.bf16.msra.mxu0 %v1005_v14  ;;  %v1034_v41 = vld [vmem:[%s1325_s1 + $0x128] sm:$0xff]   ;;  %v1036_v43 = vld [vmem:[%s1325_s1 + $0x120] sm:$0xff]   ;;  %v1042_v49 = vld [vmem:[%s1325_s1 + $0x118] sm:$0xff]  }
  0x11   :  { %930 = vmatpush3.bf16.msra.mxu1 %v1006_v15  ;;  %903 = vmatprep.subr.bf16.mxu0 %v1007_v16  ;;  %v1040_v45 = vld [vmem:[%s1326_s0 + $0x44] ss:$28 sps:$4 sm:$0xff]   ;;  %v1047_v50 = vld [vmem:[%s1325_s1 + $0x188] sm:$0xff]   ;;  %v1045_v51 = vld [vmem:[%s1325_s1 + $0x150] sm:$0xff]  }
  0x12   :  { %931 = vmatprep.subr.bf16.mxu1 %v1008_v17  ;;  %v1044_v48 = vld [vmem:[%s1326_s0 + $0x40] ss:$28 sps:$4 sm:$0xff]   ;;  %v1046_v52 = vld [vmem:[%s1325_s1 + $0x110] sm:$0xff]   ;;  %v1048_v53 = vld [vmem:[%s1325_s1 + $0x148] sm:$0xff]  }
  0x13   :  { %v1052_v54 = vld [vmem:[%s1325_s1 + $0x180] sm:$0xff]   ;;  %v1049_v55 = vld [vmem:[%s1325_s1 + $0x108] sm:$0xff]   ;;  %v1055_v56 = vld [vmem:[%s1326_s0 + $0x14] ss:$28 sps:$4 sm:$0xff]  }
  0x14   :  { %904 = vmatpush3.bf16.msra.mxu0 %v1009_v18  ;;  %v1056_v57 = vld [vmem:[%s1326_s0 + $0x18] ss:$28 sps:$4 sm:$0xff]   ;;  %v1057_v58 = vld [vmem:[%s1326_s0 + $0x50] ss:$28 sps:$4 sm:$0xff]   ;;  %v1050_v59 = vld [vmem:[%s1325_s1 + $0x140] sm:$0xff]  }
  0x15   :  { %932 = vmatpush3.bf16.msra.mxu1 %v1010_v19  ;;  %905 = vmatprep.subr.bf16.mxu0 %v1011_v20  ;;  %v1051_v60 = vld [vmem:[%s1325_s1 + $0x100] sm:$0xff]   ;;  %v1053_v61 = vld [vmem:[%s1326_s0 + $0x10] ss:$28 sps:$4 sm:$0xff]  }
  0x16   :  { %933 = vmatprep.subr.bf16.mxu1 %v1012_v21  ;;  %v1058_v62 = vld [vmem:[%s1326_s0 + $0x4c] ss:$28 sps:$4 sm:$0xff]  }
  0x17   :  { %v1060_v63 = vld [vmem:[%s1326_s0 + $0x48] ss:$28 sps:$4 sm:$0xff]  }
  0x18   :  { %906 = vmatpush3.bf16.msra.mxu0 %v1013_v22 }
  0x19   :  { %934 = vmatpush3.bf16.msra.mxu1 %v1014_v23  ;;  %907 = vmatprep.subr.bf16.mxu0 %v1015_v24 }
  0x1a   :  { %935 = vmatprep.subr.bf16.mxu1 %v1016_v25 }
  0x1c   :  { %908 = vmatpush3.bf16.msra.mxu0 %v1017_v26 }
  0x1d   :  { %936 = vmatpush3.bf16.msra.mxu1 %v1018_v27  ;;  %909 = vmatprep.subr.bf16.mxu0 %v1019_v28 }
  0x1e   :  { %937 = vmatprep.subr.bf16.mxu1 %v1020_v29 }
  0x20   :  { %910 = vmatpush3.bf16.msra.mxu0 %v1021_v30 }
  0x21   :  { %938 = vmatpush3.bf16.msra.mxu1 %v1022_v31  ;;  %951 = vmatprep.subr.bf16.mxu0 %v1029_v36 }
  0x22   :  { %983 = vmatprep.subr.bf16.mxu1 %v1047_v50 }
  0x23   :  { %552 = vmatmul.mubr.bf16.vlgmr.msra.gmra.mxu0 %v1023_v32 }
  0x24   :  { %601 = vmatmul.mubr.bf16.vlgmr.msra.gmra.mxu1 %v1026_v34  ;;  %952 = vmatpush3.bf16.msra.mxu0 %v1030_v37 }
  0x25   :  { %953 = vmatprep.subr.bf16.mxu0 %v1031_v38  ;;  %559 = vmatprep.mubr.bf16.mxu0 %v1038_v44 }
  0x26   :  { %608 = vmatprep.mubr.bf16.mxu1 %v1040_v45  ;;  %984 = vmatpush3.bf16.msra.mxu1 %v1047_v50 }
  0x27   :  { %985 = vmatprep.subr.bf16.mxu1 %v1052_v54 }
  0x28   :  { %954 = vmatpush3.bf16.msra.mxu0 %v1032_v39 }
  0x29   :  { %955 = vmatprep.subr.bf16.mxu0 %v1033_v40 }
  0x2a   :  { %986 = vmatpush3.bf16.msra.mxu1 %v1052_v54 }
  0x2b   :  { %560 = vmatmul.mubr.bf16.gmra.mxu0 %v1043_v47 }
  0x2c   :  { %956 = vmatpush3.bf16.msra.mxu0 %v1034_v41  ;;  %609 = vmatmul.mubr.bf16.gmra.mxu1 %v1044_v48 }
  0x2d   :  { %957 = vmatprep.subr.bf16.mxu0 %v1035_v42  ;;  %649 = vmatprep.mubr.bf16.mxu0 %v1055_v56 }
  0x2e   :  { %987 = vmatprep.mubr.msk.bf16.mxu1 %vm512_vm0, %v1056_v57 }
  0x30   :  { %958 = vmatpush3.bf16.msra.mxu0 %v1036_v43 }
  0x31   :  { %959 = vmatprep.subr.bf16.mxu0 %v1037_v46 }
  0x34   :  { %960 = vmatpush3.bf16.msra.mxu0 %v1042_v49  ;;  %988 = vmatmul.mubr.msk.bf16.vlgmr.msra.gmra.mxu1 %vm512_vm0, %v1057_v58 }
  0x35   :  { %961 = vmatprep.subr.bf16.mxu0 %v1045_v51 }
  0x38   :  { %962 = vmatpush3.bf16.msra.mxu0 %v1046_v52 }
  0x39   :  { %963 = vmatprep.subr.bf16.mxu0 %v1048_v53 }
  0x3c   :  { %964 = vmatpush3.bf16.msra.mxu0 %v1049_v55 }
  0x3d   :  { %965 = vmatprep.subr.bf16.mxu0 %v1050_v59 }
  0x40   :  { %966 = vmatpush3.bf16.msra.mxu0 %v1051_v60 }
  0x43   :  { %650 = vmatmul.mubr.bf16.vlgmr.msra.gmra.mxu0 %v1053_v61 }
  0x44   :  { %657 = vmatprep.mubr.bf16.mxu0 %v1058_v62 }
  0x4b   :  { %658 = vmatmul.mubr.bf16.gmra.mxu0 %v1060_v63 }
  0xe3   :  { %v911_v1 = vpop.f32.mrf.mxu0 }
  0xe4   :  { %v939_v0 = vpop.f32.mrf.mxu1 }
  0xe5   :  { %v912_v3 = vpop.f32.mrf.mxu0 }
  0xe6   :  { %v940_v2 = vpop.f32.mrf.mxu1  ;;  %v913_v20 = vadd.f32 %v912_v3, %v911_v1 }
  0xe7   :  { %v914_v5 = vpop.f32.mrf.mxu0  ;;  %v941_v21 = vadd.f32 %v940_v2, %v939_v0 }
  0xe8   :  { %v942_v4 = vpop.f32.mrf.mxu1 }
  0xe9   :  { %v915_v7 = vpop.f32.mrf.mxu0  ;;  %v603_v30 = vadd.f32 %v941_v21, %v913_v20 }
  0xea   :  { %v943_v6 = vpop.f32.mrf.mxu1  ;;  %v916_v22 = vadd.f32 %v915_v7, %v914_v5 }
  0xeb   :  { %v917_v9 = vpop.f32.mrf.mxu0  ;;  %v944_v23 = vadd.f32 %v943_v6, %v942_v4 }
  0xec   :  { %v945_v8 = vpop.f32.mrf.mxu1 }
  0xed   :  { %v918_v11 = vpop.f32.mrf.mxu0  ;;  %v606_v31 = vadd.f32 %v944_v23, %v916_v22 }
  0xee   :  { %v946_v10 = vpop.f32.mrf.mxu1  ;;  %v919_v26 = vadd.f32 %v918_v11, %v917_v9 }
  0xef   :  { %v920_v13 = vpop.f32.mrf.mxu0  ;;  %v947_v27 = vadd.f32 %v946_v10, %v945_v8 }
  0xf0   :  { %v948_v12 = vpop.f32.mrf.mxu1 }
  0xf1   :  { %v921_v15 = vpop.f32.mrf.mxu0  ;;  %v611_v36 = vadd.f32 %v947_v27, %v919_v26  ;;  %v892_v27 = vld [vmem:[%s1328_s3] ss:$0 sm:$0xff] }
  0xf2   :  { %v949_v14 = vpop.f32.mrf.mxu1  ;;  %v922_v39 = vadd.f32 %v921_v15, %v920_v13 }
  0xf3   :  { %v950_v40 = vadd.f32 %v949_v14, %v948_v12 }
  0xf4   :  { %v989_v16 = vpop.f32.mrf.mxu1 }
  0xf5   :  { %v614_v47 = vadd.f32 %v950_v40, %v922_v39 }
  0xf6   :  { %v700_v19 = vpop.f32.mrf.mxu1 }
  0xf8   :  { %v990_v29 = vpop.f32.mrf.mxu1 }
  0xfa   :  { %v703_v37 = vpop.f32.mrf.mxu1 }
 0x103   :  { %v967_v17 = vpop.f32.mrf.mxu0 }
 0x105   :  { %v968_v18 = vpop.f32.mrf.mxu0 }
 0x106   :  { %v969_v25 = vadd.f32 %v968_v18, %v967_v17  ;;  %v744_v18 = vld [vmem:[%s1327_s2] sm:$0x1] }
 0x107   :  { %v970_v24 = vpop.f32.mrf.mxu0 }
 0x108   :  { %v652_v34 = vadd.f32 %v969_v25, %v603_v30 }
 0x109   :  { %v971_v28 = vpop.f32.mrf.mxu0 }
 0x10a   :  { %v972_v32 = vadd.f32 %v971_v28, %v970_v24  ;;  %v701_v44 = vadd.f32 %v700_v19, %v652_v34 }
 0x10b   :  { %v973_v33 = vpop.f32.mrf.mxu0 }
 0x10c   :  { %v655_v35 = vadd.f32 %v972_v32, %v606_v31  ;;  %v725_v51 = vmul.f32 %v701_v44, %v701_v44 }
 0x10d   :  { %v974_v38 = vpop.f32.mrf.mxu0 }
 0x10e   :  { %v704_v41 = vadd.f32 %v703_v37, %v655_v35  ;;  %v975_v42 = vadd.f32 %v974_v38, %v973_v33  ;;  %v773_v37 = vld [vmem:[%s1329_s4] sm:$0xff] }
 0x10f   :  { %v976_v43 = vpop.f32.mrf.mxu0 }
 0x110   :  { %v660_v45 = vadd.f32 %v975_v42, %v611_v36  ;;  %v726_v48 = vmul.f32 %v704_v41, %v704_v41  ;;  %v715_v52 = vadd.f32 %v704_v41, %v701_v44  ;;  %v775_v36 = vld [vmem:[%s1329_s4 + $0x10] sm:$0xff] }
 0x111   :  { %v977_v46 = vpop.f32.mrf.mxu0 }
 0x112   :  { %v709_v49 = vadd.f32 %v989_v16, %v660_v45  ;;  %v978_v50 = vadd.f32 %v977_v46, %v976_v43  ;;  %v729_v55 = vadd.f32 %v726_v48, %v725_v51  ;;  %v750_v16 = vlaneseq  ;;  %v774_v45 = vld [vmem:[%s1329_s4 + $0x8] sm:$0xff] }
 0x113   :  { %v11_v48 = vstv %s1330_s5 }
 0x114   :  { %v727_v53 = vmul.f32 %v709_v49, %v709_v49  ;;  %v663_v54 = vadd.f32 %v978_v50, %v614_v47  ;;  %v716_v56 = vadd.f32 %v715_v52, %v709_v49  ;;  %v751_v17 = vshrl.u32 %v750_v16, 7  ;;  %12 = vst [vmem:[#allocation2] sm:$0x1] %v11_v48 }
 0x116   :  { %v712_v57 = vadd.f32 %v990_v29, %v663_v54  ;;  %v730_v58 = vadd.f32 %v729_v55, %v727_v53  ;;  %v752_v19 = vsub.s32 0, %v751_v17 }
 0x118   :  { %v717_v59 = vadd.f32 %v716_v56, %v712_v57  ;;  %v728_v60 = vmul.f32 %v712_v57, %v712_v57 }
 0x11a   :  { %v718_v61 = vrot.slane %v717_v59, 4  ;;  %v731_v62 = vadd.f32 %v730_v58, %v728_v60 }
 0x11c   :  { %v719_v63 = vadd.f32 %v718_v61, %v717_v59  ;;  %v732_v0 = vrot.slane %v731_v62, 4 }
 0x11e   :  { %v720_v1 = vrot.slane %v719_v63, 2  ;;  %v733_v2 = vadd.f32 %v732_v0, %v731_v62 }
 0x120   :  { %v721_v3 = vadd.f32 %v720_v1, %v719_v63  ;;  %v734_v4 = vrot.slane %v733_v2, 2  ;;  %v813_v1 = vld [vmem:[#allocation2] sm:$0x1] }
 0x122   :  { %v722_v5 = vrot.slane %v721_v3, 1  ;;  %v735_v6 = vadd.f32 %v734_v4, %v733_v2  ;;  %v796_v2 = vld [vmem:[#allocation2] sm:$0x1] }
 0x124   :  { %v723_v7 = vadd.f32 %v722_v5, %v721_v3  ;;  %v736_v8 = vrot.slane %v735_v6, 1 }
 0x126   :  { %v724_v9 = vmul.f32 0.03125, %v723_v7  ;;  %v737_v10 = vadd.f32 %v736_v8, %v735_v6 }
 0x128   :  { %v738_v11 = vmul.f32 0.03125, %v737_v10  ;;  %v739_v12 = vmul.f32 %v724_v9, %v724_v9  ;;  %v748_v22 = vsub.f32 %v709_v49, %v724_v9  ;;  %v746_v24 = vsub.f32 %v701_v44, %v724_v9  ;;  %v776_v44 = vld [vmem:[%s1329_s4 + $0x18] sm:$0xff] }
 0x129   :  { %v749_v25 = vsub.f32 %v712_v57, %v724_v9  ;;  %v747_v26 = vsub.f32 %v704_v41, %v724_v9 }
 0x12a   :  { %v740_v13 = vsub.f32 %v738_v11, %v739_v12 }
 0x12c   :  { %v741_v14 = vmax.f32 %v740_v13, 0.0 }
 0x12e   :  { %v742_v15 = vadd.f32 1e-05, %v741_v14 }
 0x130   :  { %1061 = vrsqrt.f32 %v742_v15 }
 0x13d   :  { %v1062_v20 = vpop.eup %1061 }
 0x13e   :  { %v745_v21 = vmul.f32 %v1062_v20, %v744_v18 }
 0x140   :  { %v753_v23 = vrot.slane %v745_v21, %v752_v19 }
 0x142   :  { %v756_v28 = vmul.f32 %v753_v23, %v748_v22  ;;  %v754_v29 = vmul.f32 %v753_v23, %v746_v24  ;;  %v757_v30 = vmul.f32 %v753_v23, %v749_v25  ;;  %v755_v31 = vmul.f32 %v753_v23, %v747_v26 }
 0x144   :  { %v767_v32 = vadd.f32 %v892_v27, %v756_v28  ;;  %v765_v33 = vadd.f32 %v892_v27, %v754_v29  ;;  %v768_v34 = vadd.f32 %v892_v27, %v757_v30  ;;  %v766_v35 = vadd.f32 %v892_v27, %v755_v31 }
 0x146   :  { %v771_v38 = vmax.f32 %v767_v32, 0.0  ;;  %v769_v39 = vmax.f32 %v765_v33, 0.0  ;;  %v772_v42 = vmax.f32 %v768_v34, 0.0  ;;  %v770_v43 = vmax.f32 %v766_v35, 0.0 }
 0x148   :  { %v779_v40 = vmul.f32 %v775_v36, %v771_v38  ;;  %v777_v41 = vmul.f32 %v773_v37, %v769_v39  ;;  %v780_v46 = vmul.f32 %v776_v44, %v772_v42  ;;  %v778_v47 = vmul.f32 %v774_v45, %v770_v43 }
 0x14a   :  { %785 = vadd.xlane.f32.xlu1 %v779_v40  ;;  %781 = vadd.xlane.f32.xlu0 %v777_v41 }
 0x14e   :  { %787 = vadd.xlane.f32.xlu1 %v780_v46  ;;  %783 = vadd.xlane.f32.xlu0 %v778_v47 }
 0x1d3   :  { %v786_v49 = vpop.xlane.xlu1 %785  ;;  %v782_v50 = vpop.xlane.xlu0 %781 }
 0x1d7   :  { %v788_v51 = vpop.xlane.xlu1 %787  ;;  %v784_v52 = vpop.xlane.xlu0 %783 }
 0x1d8   :  { %v806_v53 = vadd.f32 %v788_v51, %v786_v49  ;;  %v789_v54 = vadd.f32 %v784_v52, %v782_v50 }
 0x1da   :  { %v807_v55 = vrot.slane %v806_v53, 4  ;;  %v790_v56 = vrot.slane %v789_v54, 4 }
 0x1dc   :  { %v808_v57 = vadd.f32 %v807_v55, %v806_v53  ;;  %v791_v58 = vadd.f32 %v790_v56, %v789_v54 }
 0x1de   :  { %v809_v59 = vrot.slane %v808_v57, 2  ;;  %v792_v60 = vrot.slane %v791_v58, 2 }
 0x1e0   :  { %v810_v61 = vadd.f32 %v809_v59, %v808_v57  ;;  %v793_v62 = vadd.f32 %v792_v60, %v791_v58 }
 0x1e2   :  { %v811_v63 = vrot.slane %v810_v61, 1  ;;  %v794_v0 = vrot.slane %v793_v62, 1 }
 0x1e4   :  { %v812_v3 = vadd.f32 %v811_v63, %v810_v61  ;;  %v795_v4 = vadd.f32 %v794_v0, %v793_v62 }
 0x1e6   :  { %v814_v5 = vadd.f32 %v813_v1, %v812_v3  ;;  %v797_v6 = vadd.f32 %v796_v2, %v795_v4 }
 0x1e8   :  { %v894_v7 = vmul.f32 -1.442695, %v814_v5  ;;  %v893_v8 = vmul.f32 -1.442695, %v797_v6 }
 0x1ea   :  { %1063 = vpow2.f32 %v894_v7 }
 0x1eb   :  { %1065 = vpow2.f32 %v893_v8 }
 0x1f7   :  { %v1064_v9 = vpop.eup %1063 }
 0x1f8   :  { %v1066_v10 = vpop.eup %1065  ;;  %v818_v11 = vadd.f32 1.0, %v1064_v9 }
 0x1f9   :  { %v801_v12 = vadd.f32 1.0, %v1066_v10 }
 0x1fa   :  { %1067 = vrcp.f32 %v818_v11 }
 0x1fb   :  { %1069 = vrcp.f32 %v801_v12 }
 0x207   :  { %v1068_v13 = vpop.eup %1067 }
 0x208   :  { %v1070_v14 = vpop.eup %1069  ;;  %821 = vst.msk [vmem:[%s1331_s6 + $0x1] sm:$0x1] %vm804_vm1, %v1068_v13 }
 0x209   :  { %805 = vst.msk [vmem:[%s1331_s6] sm:$0x1] %vm804_vm1, %v1070_v14 }

</bundles_post_ra>
